<compile_context>
chip_gen: v7x
topology: tpu7x:2x2x1
jax: 0.10.0
libtpu: 0.0.40
codegen_flags: <defaults>
</compile_context>

<pallas_src>
import jax
import jax.numpy as jnp
import numpy as np
from jax.experimental import pallas as pl
from jax.experimental.pallas import tpu as pltpu

D = 128            # dim_q == dim_kv (embed dim)
H = 8              # heads
HD = D // H        # head dim = 16
FF = 4 * D         # FeedForward hidden = 512
EPS = 1e-5         # nn.LayerNorm default eps
SCALE = 1.0 / (HD ** 0.5)
MAX_STACKED_ROWS = 256   # heads-stacked score only worthwhile while H*bt*S <= this


def _layernorm(v, gamma, beta):
    # One-pass statistics: var = E[x^2] - E[x]^2 (fine for well-scaled activations).
    mean = jnp.mean(v, axis=-1, keepdims=True)
    var = jnp.mean(v * v, axis=-1, keepdims=True) - mean * mean
    return (v - mean) * jax.lax.rsqrt(var + EPS) * gamma + beta


def _layernorm_std(v):
    # Affine-free LN: gamma/beta are folded into the following matmul at pack time.
    mean = jnp.mean(v, axis=-1, keepdims=True)
    var = jnp.mean(v * v, axis=-1, keepdims=True) - mean * mean
    return (v - mean) * jax.lax.rsqrt(var + EPS)


def _stack_heads(t):
    """(R, D) -> (H*R, HD): head h occupies rows [h*R, (h+1)*R).

    One-time relayout (static lane extracts + sublane concat) so the score and
    P@V matmuls become single full-width MXU pushes; done on bf16 operands so
    only half the vregs move through the shuffle path.
    """
    return jnp.concatenate([t[:, h * HD:(h + 1) * HD] for h in range(H)], axis=0)


def attention_block_kernel(
    x_ref, y_ref, mask_ref,          # activations + precomputed additive mask
    wq_ref, wkv_ref, wo_ref,         # attention weights (bf16, pre-transposed)
    w1_ref, w2_ref,                  # FeedForward weights (bf16, pre-transposed)
    vec_ref, b1_ref,                 # packed small f32 params
    out_ref,
):
    bt, skv, _ = x_ref.shape
    _, sq, _ = y_ref.shape
    rq, rkv = bt * sq, bt * skv            # rows after folding batch into rows

    # ---- packed per-channel params: rows of a single (8, D) f32 tile ------
    vec = vec_ref[...]
    bq, bk, bv, bo = vec[0:1], vec[1:2], vec[2:3], vec[3:4]   # bq pre-scaled by 1/sqrt(HD)
    ln1g, ln1b = vec[4:5], vec[5:6]
    b2 = vec[6:7]

    x2 = x_ref[...].reshape(rkv, D)        # leading-dim merge only (no relayout)
    y2 = y_ref[...].reshape(rq, D)

    # ---- layer_norm1(y) ----------------------------------------------------
    y_ln = _layernorm(y2, ln1g, ln1b)

    # ---- in-projections: q from LN1(y); k & v fused into one matmul -------
    # 1/sqrt(HD) is folded into wq/bq at pack time.
    yb = y_ln.astype(jnp.bfloat16)
    xb = x2.astype(jnp.bfloat16)
    q = jnp.dot(yb, wq_ref[...], preferred_element_type=jnp.float32) + bq
    kv = jnp.dot(xb, wkv_ref[...], preferred_element_type=jnp.float32)
    k = kv[:, :D] + bk                     # 128-lane-aligned slices (free)
    v = kv[:, D:] + bv

    # ---- attention: heads stacked along rows, block-diagonal additive mask -
    qs = _stack_heads(q.astype(jnp.bfloat16))    # (H*rq,  HD)
    ks = _stack_heads(k.astype(jnp.bfloat16))    # (H*rkv, HD)
    vs = _stack_heads(v.astype(jnp.bfloat16))    # (H*rkv, HD)

    s = jax.lax.dot_general(                     # ONE (H*rq,HD)x(HD,H*rkv) matmul
        qs, ks, (((1,), (1,)), ((), ())),
        preferred_element_type=jnp.float32)      # (H*rq, H*rkv)
    s = s + mask_ref[...]                        # 0 where same head & batch, -1e30 elsewhere

    m = jnp.max(s, axis=-1, keepdims=True)
    p = jnp.exp(s - m)
    p = p * pl.reciprocal(jnp.sum(p, axis=-1, keepdims=True), approx=True)

    o = jnp.dot(p.astype(jnp.bfloat16), vs,      # ONE matmul, contraction H*rkv
                preferred_element_type=jnp.float32)            # (H*rq, HD)

    # ---- out-projection accumulated per head (no lane-axis concatenate) ---
    # Accumulator seeded with the h=0 product (review item).  On v5e a single
    # K=128 matmul after re-laning o may win; keep the loop for v6e/v7x.
    ob = o.astype(jnp.bfloat16)
    wo = wo_ref[...]
    attn = jnp.dot(ob[0:rq, :], wo[0:HD, :], preferred_element_type=jnp.float32)
    for h in range(1, H):                        # static unroll; sublane slices only
        attn = attn + jnp.dot(ob[h * rq:(h + 1) * rq, :],
                              wo[h * HD:(h + 1) * HD, :],
                              preferred_element_type=jnp.float32)
    y1 = attn + bo + y_ln                        # residual to LN1(y), as in torch
    # TODO(synk): MHA attention-prob / output dropout is identity (eval mode).

    # ---- FeedForward on layer_norm2(y1) + residual -------------------------
    # LN2 gamma/beta are folded into w1/b1 at pack time -> standardize only here.
    z = _layernorm_std(y1).astype(jnp.bfloat16)
    h1 = jnp.dot(z, w1_ref[...], preferred_element_type=jnp.float32) + b1_ref[...]
    h1 = jax.nn.gelu(h1, approximate=True)       # tanh form -> EUP slot (VALU freed)
    ffo = jnp.dot(h1.astype(jnp.bfloat16), w2_ref[...],
                  preferred_element_type=jnp.float32) + b2
    # TODO(synk): FeedForward dropout is identity (eval mode).
    out_ref[...] = (ffo + y1).reshape(bt, sq, D)


def _block_diag_mask(bt, Sq, Skv):
    """Additive mask for the heads-stacked score: 0 iff same head AND same batch."""
    rq, rkv = bt * Sq, bt * Skv
    rg = np.arange(H * rq)[:, None] // Sq        # group id = h*bt + b
    cg = np.arange(H * rkv)[None, :] // Skv
    return jnp.asarray(np.where(rg == cg, 0.0, -1e30), jnp.float32)


def _default_batch_tile(B, Sq, Skv):
    """Largest divisor of B with H*bt*max(Sq,Skv) <= MAX_STACKED_ROWS; on v7x
    (2 TensorCores) additionally keep >= 2 'parallel' grid steps."""
    cap = max(1, MAX_STACKED_ROWS // (H * max(Sq, Skv)))
    try:
        two_core = "v7" in jax.devices()[0].device_kind.lower()
    except Exception:
        two_core = False
    if two_core and B >= 2:
        cap = min(cap, B // 2)
    bt = 1
    for d in range(1, min(B, cap) + 1):
        if B % d == 0:
            bt = d
    return bt


def attention_block(x, y, params, *, batch_tile=None):
    """x: (B, Skv, D) key/value source, y: (B, Sq, D) query source.

    Returns (out (B, Sq, D) float32, None)  [return_weights=False path].

    batch_tile: batch elements folded into one grid step.  Default keeps the
    stacked-heads score <= 256 rows and, on v7x, leaves >= 2 parallel grid
    steps for the two TensorCores.  For much larger B*S workloads also pass
    x/y as bf16 and set pltpu.CompilerParams(vmem_limit_bytes=...) /
    pipeline_mode=pl.Buffered(1) on the constant-index weight specs.
    """
    B, Skv, _ = x.shape
    _, Sq, _ = y.shape
    bt = _default_batch_tile(B, Sq, Skv) if batch_tile is None else batch_tile
    assert B % bt == 0, "batch_tile must divide the batch size"
    assert H * bt * max(Sq, Skv) <= MAX_STACKED_ROWS, (
        "heads-stacked score too large; lower batch_tile (or switch to per-head matmuls)")
    nb = B // bt

    mask = _block_diag_mask(bt, Sq, Skv)

    def _const_spec(p):
        return pl.BlockSpec(p.shape, lambda b, _n=p.ndim: (0,) * _n)

    in_specs = [
        pl.BlockSpec((bt, Skv, D), lambda b: (b, 0, 0)),
        pl.BlockSpec((bt, Sq, D), lambda b: (b, 0, 0)),
        _const_spec(mask),
    ] + [_const_spec(p) for p in params]

    out = pl.pallas_call(
        attention_block_kernel,
        out_shape=jax.ShapeDtypeStruct((B, Sq, D), jnp.float32),
        grid=(nb,),
        in_specs=in_specs,
        out_specs=pl.BlockSpec((bt, Sq, D), lambda b: (b, 0, 0)),
        compiler_params=pltpu.CompilerParams(
            dimension_semantics=("parallel",)),
    )(x, y, mask, *params)
    return out, None   # weights=None (return_weights=False path)


def init_raw_params(key):
    """Synthetic parameters in the PyTorch layout ((out,in) weights, 1-D biases)."""
    ks = jax.random.split(key, 12)
    s = 0.05
    nrm = lambda k, shape: jax.random.normal(k, shape, jnp.float32) * s
    return dict(
        wq=nrm(ks[0], (D, D)), wk=nrm(ks[1], (D, D)), wv=nrm(ks[2], (D, D)),
        bq=nrm(ks[3], (D,)), bk=nrm(ks[4], (D,)), bv=nrm(ks[5], (D,)),
        wo=nrm(ks[6], (D, D)), bo=nrm(ks[7], (D,)),
        w1=nrm(ks[8], (FF, D)), b1=nrm(ks[9], (FF,)),
        w2=nrm(ks[10], (D, FF)), b2=nrm(ks[11], (D,)),
        ln1g=jnp.ones((D,), jnp.float32), ln1b=jnp.zeros((D,), jnp.float32),
        ln2g=jnp.ones((D,), jnp.float32), ln2b=jnp.zeros((D,), jnp.float32),
    )


def pack_params(p):
    """Kernel layout: pre-transposed bf16 matmul weights (f32 accumulation in
    kernel), k/v weights fused, 1/sqrt(HD) folded into Wq/bq, LN2 gamma/beta
    folded into W1/b1, remaining (D,)-vectors packed into one (8,128) f32 tile."""
    bf = lambda a: a.astype(jnp.bfloat16)
    wq_t = bf(p["wq"].T * SCALE)                                   # (D, D), scale folded
    wkv_t = bf(jnp.concatenate([p["wk"].T, p["wv"].T], axis=1))    # (D, 2D)
    wo_t = bf(p["wo"].T)                                           # (D, D)
    w1_t = bf(p["ln2g"][:, None] * p["w1"].T)                      # (D, FF), LN2 gamma folded
    w2_t = bf(p["w2"].T)                                           # (FF, D)
    b1 = (p["b1"] + p["ln2b"] @ p["w1"].T).reshape(1, FF).astype(jnp.float32)  # LN2 beta folded
    vec = jnp.stack([p["bq"] * SCALE, p["bk"], p["bv"], p["bo"],
                     p["ln1g"], p["ln1b"], p["b2"],
                     jnp.zeros((D,), jnp.float32)], axis=0).astype(jnp.float32)  # (8, D)
    return (wq_t, wkv_t, wo_t, w1_t, w2_t, vec, b1)


def reference(x, y, p):
    """Pure-JAX fp32 reference of the PyTorch forward (loose sanity check)."""
    def ln(v, g, b):
        mu = v.mean(-1, keepdims=True)
        var = ((v - mu) ** 2).mean(-1, keepdims=True)
        return (v - mu) / jnp.sqrt(var + EPS) * g + b

    B, Sq, _ = y.shape
    _, Skv, _ = x.shape
    y_ln = ln(y, p["ln1g"], p["ln1b"])
    q = y_ln @ p["wq"].T + p["bq"]
    k = x @ p["wk"].T + p["bk"]
    v = x @ p["wv"].T + p["bv"]
    qh = q.reshape(B, Sq, H, HD).transpose(0, 2, 1, 3)
    kh = k.reshape(B, Skv, H, HD).transpose(0, 2, 1, 3)
    vh = v.reshape(B, Skv, H, HD).transpose(0, 2, 1, 3)
    s = jnp.einsum("bhqe,bhke->bhqk", qh, kh) / jnp.sqrt(jnp.float32(HD))
    o = jnp.einsum("bhqk,bhke->bhqe", jax.nn.softmax(s, axis=-1), vh)
    o = o.transpose(0, 2, 1, 3).reshape(B, Sq, D)
    y1 = o @ p["wo"].T + p["bo"] + y_ln
    ff = jax.nn.gelu(ln(y1, p["ln2g"], p["ln2b"]) @ p["w1"].T + p["b1"],
                     approximate=False) @ p["w2"].T + p["b2"]
    return ff + y1


if __name__ == "__main__":
    key = jax.random.PRNGKey(0)
    kx, ky, kp = jax.random.split(key, 3)

    B, Skv, Sq = 2, 8, 8
    x = jax.random.normal(kx, (B, Skv, D), jnp.float32)   # key/value input
    y = jax.random.normal(ky, (B, Sq, D), jnp.float32)    # query input

    raw = init_raw_params(kp)
    params = pack_params(raw)

    out, weights = attention_block(x, y, params)
    out = jax.block_until_ready(out)

    assert out.shape == (B, Sq, D) and out.dtype == jnp.float32
    assert weights is None
    # Loose tolerance: bf16 matmuls (f32 acc) + approx reciprocal + tanh GELU.
    ref = reference(x, y, raw)
    assert float(jnp.max(jnp.abs(out - ref))) < 0.1, "mismatch vs fp32 reference"
    print("KERNEL_OK")
</pallas_src>

<mosaic_0001>
module attributes {stable_mosaic.version = 11 : i64} {
  func.func @attention_block_kernel(%arg0: i32, %arg1: memref<2x8x128xf32, #tpu.memory_space<vmem>>, %arg2: memref<2x8x128xf32, #tpu.memory_space<vmem>>, %arg3: memref<128x128xf32, #tpu.memory_space<vmem>>, %arg4: memref<128x128xbf16, #tpu.memory_space<vmem>>, %arg5: memref<128x256xbf16, #tpu.memory_space<vmem>>, %arg6: memref<128x128xbf16, #tpu.memory_space<vmem>>, %arg7: memref<128x512xbf16, #tpu.memory_space<vmem>>, %arg8: memref<512x128xbf16, #tpu.memory_space<vmem>>, %arg9: memref<8x128xf32, #tpu.memory_space<vmem>>, %arg10: memref<1x512xf32, #tpu.memory_space<vmem>>, %arg11: memref<2x8x128xf32, #tpu.memory_space<vmem>>) attributes {dimension_semantics = [#tpu.dimension_semantics<parallel>], iteration_bounds = array<i64: 1>, scalar_prefetch = 0 : i64, scratch_operands = 0 : i64, tpu.core_type = #tpu.core_type<tc>, window_params = [{transform_indices = @transform_0, window_bounds = array<i64: 2, 8, 128>}, {transform_indices = @transform_1, window_bounds = array<i64: 2, 8, 128>}, {pipeline_mode = #tpu.pipeline_mode<synchronous>, transform_indices = @transform_2, window_bounds = array<i64: 128, 128>}, {pipeline_mode = #tpu.pipeline_mode<synchronous>, transform_indices = @transform_3, window_bounds = array<i64: 128, 128>}, {pipeline_mode = #tpu.pipeline_mode<synchronous>, transform_indices = @transform_4, window_bounds = array<i64: 128, 256>}, {pipeline_mode = #tpu.pipeline_mode<synchronous>, transform_indices = @transform_5, window_bounds = array<i64: 128, 128>}, {pipeline_mode = #tpu.pipeline_mode<synchronous>, transform_indices = @transform_6, window_bounds = array<i64: 128, 512>}, {pipeline_mode = #tpu.pipeline_mode<synchronous>, transform_indices = @transform_7, window_bounds = array<i64: 512, 128>}, {pipeline_mode = #tpu.pipeline_mode<synchronous>, transform_indices = @transform_8, window_bounds = array<i64: 8, 128>}, {pipeline_mode = #tpu.pipeline_mode<synchronous>, transform_indices = @transform_9, window_bounds = array<i64: 1, 512>}, {transform_indices = @transform_10, window_bounds = array<i64: 2, 8, 128>}]} {
    %c0 = arith.constant 0 : index
    %c0_0 = arith.constant 0 : index
    %0 = vector.load %arg9[%c0, %c0_0] : memref<8x128xf32, #tpu.memory_space<vmem>>, vector<8x128xf32>
    %1 = vector.extract_strided_slice %0 {offsets = [0, 0], sizes = [1, 128], strides = [1, 1]} : vector<8x128xf32> to vector<1x128xf32>
    %2 = vector.extract_strided_slice %0 {offsets = [1, 0], sizes = [1, 128], strides = [1, 1]} : vector<8x128xf32> to vector<1x128xf32>
    %3 = vector.extract_strided_slice %0 {offsets = [2, 0], sizes = [1, 128], strides = [1, 1]} : vector<8x128xf32> to vector<1x128xf32>
    %4 = vector.extract_strided_slice %0 {offsets = [3, 0], sizes = [1, 128], strides = [1, 1]} : vector<8x128xf32> to vector<1x128xf32>
    %5 = vector.extract_strided_slice %0 {offsets = [4, 0], sizes = [1, 128], strides = [1, 1]} : vector<8x128xf32> to vector<1x128xf32>
    %6 = vector.extract_strided_slice %0 {offsets = [5, 0], sizes = [1, 128], strides = [1, 1]} : vector<8x128xf32> to vector<1x128xf32>
    %7 = vector.extract_strided_slice %0 {offsets = [6, 0], sizes = [1, 128], strides = [1, 1]} : vector<8x128xf32> to vector<1x128xf32>
    %c0_1 = arith.constant 0 : index
    %c0_2 = arith.constant 0 : index
    %c0_3 = arith.constant 0 : index
    %8 = vector.load %arg1[%c0_1, %c0_2, %c0_3] : memref<2x8x128xf32, #tpu.memory_space<vmem>>, vector<2x8x128xf32>
    %9 = vector.shape_cast %8 : vector<2x8x128xf32> to vector<16x128xf32>
    %c0_4 = arith.constant 0 : index
    %c0_5 = arith.constant 0 : index
    %c0_6 = arith.constant 0 : index
    %10 = vector.load %arg2[%c0_4, %c0_5, %c0_6] : memref<2x8x128xf32, #tpu.memory_space<vmem>>, vector<2x8x128xf32>
    %11 = vector.shape_cast %10 : vector<2x8x128xf32> to vector<16x128xf32>
    %cst = arith.constant dense<0.000000e+00> : vector<16xf32>
    %12 = vector.multi_reduction <add>, %11, %cst [1] : vector<16x128xf32> to vector<16xf32>
    %13 = vector.shape_cast %12 : vector<16xf32> to vector<16x1xf32>
    %cst_7 = arith.constant 1.280000e+02 : f32
    %14 = vector.broadcast %cst_7 : f32 to vector<16x1xf32>
    %15 = arith.divf %13, %14 : vector<16x1xf32>
    %16 = arith.mulf %11, %11 : vector<16x128xf32>
    %cst_8 = arith.constant dense<0.000000e+00> : vector<16xf32>
    %17 = vector.multi_reduction <add>, %16, %cst_8 [1] : vector<16x128xf32> to vector<16xf32>
    %18 = vector.shape_cast %17 : vector<16xf32> to vector<16x1xf32>
    %cst_9 = arith.constant 1.280000e+02 : f32
    %19 = vector.broadcast %cst_9 : f32 to vector<16x1xf32>
    %20 = arith.divf %18, %19 : vector<16x1xf32>
    %21 = arith.mulf %15, %15 : vector<16x1xf32>
    %22 = arith.subf %20, %21 : vector<16x1xf32>
    %23 = vector.broadcast %15 : vector<16x1xf32> to vector<16x128xf32>
    %24 = arith.subf %11, %23 : vector<16x128xf32>
    %cst_10 = arith.constant 9.99999974E-6 : f32
    %25 = vector.broadcast %cst_10 : f32 to vector<16x1xf32>
    %26 = arith.addf %22, %25 : vector<16x1xf32>
    %27 = math.rsqrt %26 : vector<16x1xf32>
    %28 = vector.broadcast %27 : vector<16x1xf32> to vector<16x128xf32>
    %29 = arith.mulf %24, %28 : vector<16x128xf32>
    %30 = vector.broadcast %5 : vector<1x128xf32> to vector<16x128xf32>
    %31 = arith.mulf %29, %30 : vector<16x128xf32>
    %32 = vector.broadcast %6 : vector<1x128xf32> to vector<16x128xf32>
    %33 = arith.addf %31, %32 : vector<16x128xf32>
    %34 = arith.truncf %33 : vector<16x128xf32> to vector<16x128xbf16>
    %35 = arith.truncf %9 : vector<16x128xf32> to vector<16x128xbf16>
    %c0_11 = arith.constant 0 : index
    %c0_12 = arith.constant 0 : index
    %36 = vector.load %arg4[%c0_11, %c0_12] : memref<128x128xbf16, #tpu.memory_space<vmem>>, vector<128x128xbf16>
    %cst_13 = arith.constant dense<0.000000e+00> : vector<16x128xf32>
    %37 = tpu.matmul %34, %36, %cst_13 {dimension_numbers = #tpu.dot_dimension_numbers<[1], [0], [0], [1], [0, 0, 1, 1], [], []>} : vector<16x128xbf16>, vector<128x128xbf16>, vector<16x128xf32> -> vector<16x128xf32>
    %38 = vector.broadcast %1 : vector<1x128xf32> to vector<16x128xf32>
    %39 = arith.addf %37, %38 : vector<16x128xf32>
    %c0_14 = arith.constant 0 : index
    %c0_15 = arith.constant 0 : index
    %40 = vector.load %arg5[%c0_14, %c0_15] : memref<128x256xbf16, #tpu.memory_space<vmem>>, vector<128x256xbf16>
    %cst_16 = arith.constant dense<0.000000e+00> : vector<16x256xf32>
    %41 = tpu.matmul %35, %40, %cst_16 {dimension_numbers = #tpu.dot_dimension_numbers<[1], [0], [0], [1], [0, 0, 1, 1], [], []>} : vector<16x128xbf16>, vector<128x256xbf16>, vector<16x256xf32> -> vector<16x256xf32>
    %42 = vector.extract_strided_slice %41 {offsets = [0, 0], sizes = [16, 128], strides = [1, 1]} : vector<16x256xf32> to vector<16x128xf32>
    %43 = vector.broadcast %2 : vector<1x128xf32> to vector<16x128xf32>
    %44 = arith.addf %42, %43 : vector<16x128xf32>
    %45 = vector.extract_strided_slice %41 {offsets = [0, 128], sizes = [16, 128], strides = [1, 1]} : vector<16x256xf32> to vector<16x128xf32>
    %46 = vector.broadcast %3 : vector<1x128xf32> to vector<16x128xf32>
    %47 = arith.addf %45, %46 : vector<16x128xf32>
    %48 = arith.truncf %39 : vector<16x128xf32> to vector<16x128xbf16>
    %49 = vector.extract_strided_slice %48 {offsets = [0, 0], sizes = [16, 16], strides = [1, 1]} : vector<16x128xbf16> to vector<16x16xbf16>
    %50 = vector.extract_strided_slice %48 {offsets = [0, 16], sizes = [16, 16], strides = [1, 1]} : vector<16x128xbf16> to vector<16x16xbf16>
    %51 = vector.extract_strided_slice %48 {offsets = [0, 32], sizes = [16, 16], strides = [1, 1]} : vector<16x128xbf16> to vector<16x16xbf16>
    %52 = vector.extract_strided_slice %48 {offsets = [0, 48], sizes = [16, 16], strides = [1, 1]} : vector<16x128xbf16> to vector<16x16xbf16>
    %53 = vector.extract_strided_slice %48 {offsets = [0, 64], sizes = [16, 16], strides = [1, 1]} : vector<16x128xbf16> to vector<16x16xbf16>
    %54 = vector.extract_strided_slice %48 {offsets = [0, 80], sizes = [16, 16], strides = [1, 1]} : vector<16x128xbf16> to vector<16x16xbf16>
    %55 = vector.extract_strided_slice %48 {offsets = [0, 96], sizes = [16, 16], strides = [1, 1]} : vector<16x128xbf16> to vector<16x16xbf16>
    %56 = vector.extract_strided_slice %48 {offsets = [0, 112], sizes = [16, 16], strides = [1, 1]} : vector<16x128xbf16> to vector<16x16xbf16>
    %57 = tpu.concatenate %49, %50, %51, %52, %53, %54, %55, %56 in 0 : vector<16x16xbf16>, vector<16x16xbf16>, vector<16x16xbf16>, vector<16x16xbf16>, vector<16x16xbf16>, vector<16x16xbf16>, vector<16x16xbf16>, vector<16x16xbf16> -> vector<128x16xbf16>
    %58 = arith.truncf %44 : vector<16x128xf32> to vector<16x128xbf16>
    %59 = vector.extract_strided_slice %58 {offsets = [0, 0], sizes = [16, 16], strides = [1, 1]} : vector<16x128xbf16> to vector<16x16xbf16>
    %60 = vector.extract_strided_slice %58 {offsets = [0, 16], sizes = [16, 16], strides = [1, 1]} : vector<16x128xbf16> to vector<16x16xbf16>
    %61 = vector.extract_strided_slice %58 {offsets = [0, 32], sizes = [16, 16], strides = [1, 1]} : vector<16x128xbf16> to vector<16x16xbf16>
    %62 = vector.extract_strided_slice %58 {offsets = [0, 48], sizes = [16, 16], strides = [1, 1]} : vector<16x128xbf16> to vector<16x16xbf16>
    %63 = vector.extract_strided_slice %58 {offsets = [0, 64], sizes = [16, 16], strides = [1, 1]} : vector<16x128xbf16> to vector<16x16xbf16>
    %64 = vector.extract_strided_slice %58 {offsets = [0, 80], sizes = [16, 16], strides = [1, 1]} : vector<16x128xbf16> to vector<16x16xbf16>
    %65 = vector.extract_strided_slice %58 {offsets = [0, 96], sizes = [16, 16], strides = [1, 1]} : vector<16x128xbf16> to vector<16x16xbf16>
    %66 = vector.extract_strided_slice %58 {offsets = [0, 112], sizes = [16, 16], strides = [1, 1]} : vector<16x128xbf16> to vector<16x16xbf16>
    %67 = tpu.concatenate %59, %60, %61, %62, %63, %64, %65, %66 in 0 : vector<16x16xbf16>, vector<16x16xbf16>, vector<16x16xbf16>, vector<16x16xbf16>, vector<16x16xbf16>, vector<16x16xbf16>, vector<16x16xbf16>, vector<16x16xbf16> -> vector<128x16xbf16>
    %68 = arith.truncf %47 : vector<16x128xf32> to vector<16x128xbf16>
    %69 = vector.extract_strided_slice %68 {offsets = [0, 0], sizes = [16, 16], strides = [1, 1]} : vector<16x128xbf16> to vector<16x16xbf16>
    %70 = vector.extract_strided_slice %68 {offsets = [0, 16], sizes = [16, 16], strides = [1, 1]} : vector<16x128xbf16> to vector<16x16xbf16>
    %71 = vector.extract_strided_slice %68 {offsets = [0, 32], sizes = [16, 16], strides = [1, 1]} : vector<16x128xbf16> to vector<16x16xbf16>
    %72 = vector.extract_strided_slice %68 {offsets = [0, 48], sizes = [16, 16], strides = [1, 1]} : vector<16x128xbf16> to vector<16x16xbf16>
    %73 = vector.extract_strided_slice %68 {offsets = [0, 64], sizes = [16, 16], strides = [1, 1]} : vector<16x128xbf16> to vector<16x16xbf16>
    %74 = vector.extract_strided_slice %68 {offsets = [0, 80], sizes = [16, 16], strides = [1, 1]} : vector<16x128xbf16> to vector<16x16xbf16>
    %75 = vector.extract_strided_slice %68 {offsets = [0, 96], sizes = [16, 16], strides = [1, 1]} : vector<16x128xbf16> to vector<16x16xbf16>
    %76 = vector.extract_strided_slice %68 {offsets = [0, 112], sizes = [16, 16], strides = [1, 1]} : vector<16x128xbf16> to vector<16x16xbf16>
    %77 = tpu.concatenate %69, %70, %71, %72, %73, %74, %75, %76 in 0 : vector<16x16xbf16>, vector<16x16xbf16>, vector<16x16xbf16>, vector<16x16xbf16>, vector<16x16xbf16>, vector<16x16xbf16>, vector<16x16xbf16>, vector<16x16xbf16> -> vector<128x16xbf16>
    %cst_17 = arith.constant dense<0.000000e+00> : vector<128x128xf32>
    %78 = tpu.matmul %57, %67, %cst_17 {dimension_numbers = #tpu.dot_dimension_numbers<[1], [1], [0], [0], [0, 0, 1, 0], [], []>} : vector<128x16xbf16>, vector<128x16xbf16>, vector<128x128xf32> -> vector<128x128xf32>
    %c0_18 = arith.constant 0 : index
    %c0_19 = arith.constant 0 : index
    %79 = vector.load %arg3[%c0_18, %c0_19] : memref<128x128xf32, #tpu.memory_space<vmem>>, vector<128x128xf32>
    %80 = arith.addf %78, %79 : vector<128x128xf32>
    %cst_20 = arith.constant dense<0xFF800000> : vector<128xf32>
    %81 = vector.multi_reduction <maximumf>, %80, %cst_20 [1] : vector<128x128xf32> to vector<128xf32>
    %82 = vector.shape_cast %81 : vector<128xf32> to vector<128x1xf32>
    %83 = vector.broadcast %82 : vector<128x1xf32> to vector<128x128xf32>
    %84 = arith.subf %80, %83 : vector<128x128xf32>
    %85 = math.exp %84 : vector<128x128xf32>
    %cst_21 = arith.constant dense<0.000000e+00> : vector<128xf32>
    %86 = vector.multi_reduction <add>, %85, %cst_21 [1] : vector<128x128xf32> to vector<128xf32>
    %87 = vector.shape_cast %86 : vector<128xf32> to vector<128x1xf32>
    %88 = tpu.reciprocal %87 {approx = true} : vector<128x1xf32> -> vector<128x1xf32>
    %89 = vector.broadcast %88 : vector<128x1xf32> to vector<128x128xf32>
    %90 = arith.mulf %85, %89 : vector<128x128xf32>
    %91 = arith.truncf %90 : vector<128x128xf32> to vector<128x128xbf16>
    %cst_22 = arith.constant dense<0.000000e+00> : vector<128x16xf32>
    %92 = tpu.matmul %91, %77, %cst_22 {dimension_numbers = #tpu.dot_dimension_numbers<[1], [0], [0], [1], [0, 0, 1, 1], [], []>} : vector<128x128xbf16>, vector<128x16xbf16>, vector<128x16xf32> -> vector<128x16xf32>
    %93 = arith.truncf %92 : vector<128x16xf32> to vector<128x16xbf16>
    %c0_23 = arith.constant 0 : index
    %c0_24 = arith.constant 0 : index
    %94 = vector.load %arg6[%c0_23, %c0_24] : memref<128x128xbf16, #tpu.memory_space<vmem>>, vector<128x128xbf16>
    %95 = vector.extract_strided_slice %93 {offsets = [0, 0], sizes = [16, 16], strides = [1, 1]} : vector<128x16xbf16> to vector<16x16xbf16>
    %96 = vector.extract_strided_slice %94 {offsets = [0, 0], sizes = [16, 128], strides = [1, 1]} : vector<128x128xbf16> to vector<16x128xbf16>
    %cst_25 = arith.constant dense<0.000000e+00> : vector<16x128xf32>
    %97 = tpu.matmul %95, %96, %cst_25 {dimension_numbers = #tpu.dot_dimension_numbers<[1], [0], [0], [1], [0, 0, 1, 1], [], []>} : vector<16x16xbf16>, vector<16x128xbf16>, vector<16x128xf32> -> vector<16x128xf32>
    %98 = vector.extract_strided_slice %93 {offsets = [16, 0], sizes = [16, 16], strides = [1, 1]} : vector<128x16xbf16> to vector<16x16xbf16>
    %99 = vector.extract_strided_slice %94 {offsets = [16, 0], sizes = [16, 128], strides = [1, 1]} : vector<128x128xbf16> to vector<16x128xbf16>
    %cst_26 = arith.constant dense<0.000000e+00> : vector<16x128xf32>
    %100 = tpu.matmul %98, %99, %cst_26 {dimension_numbers = #tpu.dot_dimension_numbers<[1], [0], [0], [1], [0, 0, 1, 1], [], []>} : vector<16x16xbf16>, vector<16x128xbf16>, vector<16x128xf32> -> vector<16x128xf32>
    %101 = arith.addf %97, %100 : vector<16x128xf32>
    %102 = vector.extract_strided_slice %93 {offsets = [32, 0], sizes = [16, 16], strides = [1, 1]} : vector<128x16xbf16> to vector<16x16xbf16>
    %103 = vector.extract_strided_slice %94 {offsets = [32, 0], sizes = [16, 128], strides = [1, 1]} : vector<128x128xbf16> to vector<16x128xbf16>
    %cst_27 = arith.constant dense<0.000000e+00> : vector<16x128xf32>
    %104 = tpu.matmul %102, %103, %cst_27 {dimension_numbers = #tpu.dot_dimension_numbers<[1], [0], [0], [1], [0, 0, 1, 1], [], []>} : vector<16x16xbf16>, vector<16x128xbf16>, vector<16x128xf32> -> vector<16x128xf32>
    %105 = arith.addf %101, %104 : vector<16x128xf32>
    %106 = vector.extract_strided_slice %93 {offsets = [48, 0], sizes = [16, 16], strides = [1, 1]} : vector<128x16xbf16> to vector<16x16xbf16>
    %107 = vector.extract_strided_slice %94 {offsets = [48, 0], sizes = [16, 128], strides = [1, 1]} : vector<128x128xbf16> to vector<16x128xbf16>
    %cst_28 = arith.constant dense<0.000000e+00> : vector<16x128xf32>
    %108 = tpu.matmul %106, %107, %cst_28 {dimension_numbers = #tpu.dot_dimension_numbers<[1], [0], [0], [1], [0, 0, 1, 1], [], []>} : vector<16x16xbf16>, vector<16x128xbf16>, vector<16x128xf32> -> vector<16x128xf32>
    %109 = arith.addf %105, %108 : vector<16x128xf32>
    %110 = vector.extract_strided_slice %93 {offsets = [64, 0], sizes = [16, 16], strides = [1, 1]} : vector<128x16xbf16> to vector<16x16xbf16>
    %111 = vector.extract_strided_slice %94 {offsets = [64, 0], sizes = [16, 128], strides = [1, 1]} : vector<128x128xbf16> to vector<16x128xbf16>
    %cst_29 = arith.constant dense<0.000000e+00> : vector<16x128xf32>
    %112 = tpu.matmul %110, %111, %cst_29 {dimension_numbers = #tpu.dot_dimension_numbers<[1], [0], [0], [1], [0, 0, 1, 1], [], []>} : vector<16x16xbf16>, vector<16x128xbf16>, vector<16x128xf32> -> vector<16x128xf32>
    %113 = arith.addf %109, %112 : vector<16x128xf32>
    %114 = vector.extract_strided_slice %93 {offsets = [80, 0], sizes = [16, 16], strides = [1, 1]} : vector<128x16xbf16> to vector<16x16xbf16>
    %115 = vector.extract_strided_slice %94 {offsets = [80, 0], sizes = [16, 128], strides = [1, 1]} : vector<128x128xbf16> to vector<16x128xbf16>
    %cst_30 = arith.constant dense<0.000000e+00> : vector<16x128xf32>
    %116 = tpu.matmul %114, %115, %cst_30 {dimension_numbers = #tpu.dot_dimension_numbers<[1], [0], [0], [1], [0, 0, 1, 1], [], []>} : vector<16x16xbf16>, vector<16x128xbf16>, vector<16x128xf32> -> vector<16x128xf32>
    %117 = arith.addf %113, %116 : vector<16x128xf32>
    %118 = vector.extract_strided_slice %93 {offsets = [96, 0], sizes = [16, 16], strides = [1, 1]} : vector<128x16xbf16> to vector<16x16xbf16>
    %119 = vector.extract_strided_slice %94 {offsets = [96, 0], sizes = [16, 128], strides = [1, 1]} : vector<128x128xbf16> to vector<16x128xbf16>
    %cst_31 = arith.constant dense<0.000000e+00> : vector<16x128xf32>
    %120 = tpu.matmul %118, %119, %cst_31 {dimension_numbers = #tpu.dot_dimension_numbers<[1], [0], [0], [1], [0, 0, 1, 1], [], []>} : vector<16x16xbf16>, vector<16x128xbf16>, vector<16x128xf32> -> vector<16x128xf32>
    %121 = arith.addf %117, %120 : vector<16x128xf32>
    %122 = vector.extract_strided_slice %93 {offsets = [112, 0], sizes = [16, 16], strides = [1, 1]} : vector<128x16xbf16> to vector<16x16xbf16>
    %123 = vector.extract_strided_slice %94 {offsets = [112, 0], sizes = [16, 128], strides = [1, 1]} : vector<128x128xbf16> to vector<16x128xbf16>
    %cst_32 = arith.constant dense<0.000000e+00> : vector<16x128xf32>
    %124 = tpu.matmul %122, %123, %cst_32 {dimension_numbers = #tpu.dot_dimension_numbers<[1], [0], [0], [1], [0, 0, 1, 1], [], []>} : vector<16x16xbf16>, vector<16x128xbf16>, vector<16x128xf32> -> vector<16x128xf32>
    %125 = arith.addf %121, %124 : vector<16x128xf32>
    %126 = vector.broadcast %4 : vector<1x128xf32> to vector<16x128xf32>
    %127 = arith.addf %125, %126 : vector<16x128xf32>
    %128 = arith.addf %127, %33 : vector<16x128xf32>
    %cst_33 = arith.constant dense<0.000000e+00> : vector<16xf32>
    %129 = vector.multi_reduction <add>, %128, %cst_33 [1] : vector<16x128xf32> to vector<16xf32>
    %130 = vector.shape_cast %129 : vector<16xf32> to vector<16x1xf32>
    %cst_34 = arith.constant 1.280000e+02 : f32
    %131 = vector.broadcast %cst_34 : f32 to vector<16x1xf32>
    %132 = arith.divf %130, %131 : vector<16x1xf32>
    %133 = arith.mulf %128, %128 : vector<16x128xf32>
    %cst_35 = arith.constant dense<0.000000e+00> : vector<16xf32>
    %134 = vector.multi_reduction <add>, %133, %cst_35 [1] : vector<16x128xf32> to vector<16xf32>
    %135 = vector.shape_cast %134 : vector<16xf32> to vector<16x1xf32>
    %cst_36 = arith.constant 1.280000e+02 : f32
    %136 = vector.broadcast %cst_36 : f32 to vector<16x1xf32>
    %137 = arith.divf %135, %136 : vector<16x1xf32>
    %138 = arith.mulf %132, %132 : vector<16x1xf32>
    %139 = arith.subf %137, %138 : vector<16x1xf32>
    %140 = vector.broadcast %132 : vector<16x1xf32> to vector<16x128xf32>
    %141 = arith.subf %128, %140 : vector<16x128xf32>
    %cst_37 = arith.constant 9.99999974E-6 : f32
    %142 = vector.broadcast %cst_37 : f32 to vector<16x1xf32>
    %143 = arith.addf %139, %142 : vector<16x1xf32>
    %144 = math.rsqrt %143 : vector<16x1xf32>
    %145 = vector.broadcast %144 : vector<16x1xf32> to vector<16x128xf32>
    %146 = arith.mulf %141, %145 : vector<16x128xf32>
    %147 = arith.truncf %146 : vector<16x128xf32> to vector<16x128xbf16>
    %c0_38 = arith.constant 0 : index
    %c0_39 = arith.constant 0 : index
    %148 = vector.load %arg7[%c0_38, %c0_39] : memref<128x512xbf16, #tpu.memory_space<vmem>>, vector<128x512xbf16>
    %cst_40 = arith.constant dense<0.000000e+00> : vector<16x512xf32>
    %149 = tpu.matmul %147, %148, %cst_40 {dimension_numbers = #tpu.dot_dimension_numbers<[1], [0], [0], [1], [0, 0, 1, 1], [], []>} : vector<16x128xbf16>, vector<128x512xbf16>, vector<16x512xf32> -> vector<16x512xf32>
    %c0_41 = arith.constant 0 : index
    %c0_42 = arith.constant 0 : index
    %150 = vector.load %arg10[%c0_41, %c0_42] : memref<1x512xf32, #tpu.memory_space<vmem>>, vector<1x512xf32>
    %151 = vector.broadcast %150 : vector<1x512xf32> to vector<16x512xf32>
    %152 = arith.addf %149, %151 : vector<16x512xf32>
    %153 = arith.mulf %152, %152 : vector<16x512xf32>
    %154 = arith.mulf %152, %153 : vector<16x512xf32>
    %cst_43 = arith.constant 4.471500e-02 : f32
    %155 = vector.broadcast %cst_43 : f32 to vector<16x512xf32>
    %156 = arith.mulf %155, %154 : vector<16x512xf32>
    %157 = arith.addf %152, %156 : vector<16x512xf32>
    %cst_44 = arith.constant 0.797884583 : f32
    %158 = vector.broadcast %cst_44 : f32 to vector<16x512xf32>
    %159 = arith.mulf %158, %157 : vector<16x512xf32>
    %160 = math.tanh %159 : vector<16x512xf32>
    %cst_45 = arith.constant 1.000000e+00 : f32
    %161 = vector.broadcast %cst_45 : f32 to vector<16x512xf32>
    %162 = arith.addf %161, %160 : vector<16x512xf32>
    %cst_46 = arith.constant 5.000000e-01 : f32
    %163 = vector.broadcast %cst_46 : f32 to vector<16x512xf32>
    %164 = arith.mulf %163, %162 : vector<16x512xf32>
    %165 = arith.mulf %152, %164 : vector<16x512xf32>
    %166 = arith.truncf %165 : vector<16x512xf32> to vector<16x512xbf16>
    %c0_47 = arith.constant 0 : index
    %c0_48 = arith.constant 0 : index
    %167 = vector.load %arg8[%c0_47, %c0_48] : memref<512x128xbf16, #tpu.memory_space<vmem>>, vector<512x128xbf16>
    %cst_49 = arith.constant dense<0.000000e+00> : vector<16x128xf32>
    %168 = tpu.matmul %166, %167, %cst_49 {dimension_numbers = #tpu.dot_dimension_numbers<[1], [0], [0], [1], [0, 0, 1, 1], [], []>} : vector<16x512xbf16>, vector<512x128xbf16>, vector<16x128xf32> -> vector<16x128xf32>
    %169 = vector.broadcast %7 : vector<1x128xf32> to vector<16x128xf32>
    %170 = arith.addf %168, %169 : vector<16x128xf32>
    %171 = arith.addf %170, %128 : vector<16x128xf32>
    %172 = vector.shape_cast %171 : vector<16x128xf32> to vector<2x8x128xf32>
    %c0_50 = arith.constant 0 : index
    %c0_51 = arith.constant 0 : index
    %c0_52 = arith.constant 0 : index
    %173 = vector.load %arg11[%c0_50, %c0_51, %c0_52] : memref<2x8x128xf32, #tpu.memory_space<vmem>>, vector<2x8x128xf32>
    tpu.vector_store %arg11[%c0_50, %c0_51, %c0_52], %172 {strides = array<i32>} : memref<2x8x128xf32, #tpu.memory_space<vmem>>, vector<2x8x128xf32>,
    return
  }
  func.func @transform_0(%arg0: i32) -> (i32, i32, i32) {
    %c0_i32 = arith.constant 0 : i32
    %c0_i32_0 = arith.constant 0 : i32
    %c0_i32_1 = arith.constant 0 : i32
    return %arg0, %c0_i32, %c0_i32_0 : i32, i32, i32
  }
  func.func @transform_1(%arg0: i32) -> (i32, i32, i32) {
    %c0_i32 = arith.constant 0 : i32
    %c0_i32_0 = arith.constant 0 : i32
    %c0_i32_1 = arith.constant 0 : i32
    return %arg0, %c0_i32, %c0_i32_0 : i32, i32, i32
  }
  func.func @transform_2(%arg0: i32) -> (i32, i32) {
    %c0_i32 = arith.constant 0 : i32
    %c0_i32_0 = arith.constant 0 : i32
    %c0_i32_1 = arith.constant 0 : i32
    return %c0_i32, %c0_i32_0 : i32, i32
  }
  func.func @transform_3(%arg0: i32) -> (i32, i32) {
    %c0_i32 = arith.constant 0 : i32
    %c0_i32_0 = arith.constant 0 : i32
    %c0_i32_1 = arith.constant 0 : i32
    return %c0_i32, %c0_i32_0 : i32, i32
  }
  func.func @transform_4(%arg0: i32) -> (i32, i32) {
    %c0_i32 = arith.constant 0 : i32
    %c0_i32_0 = arith.constant 0 : i32
    %c0_i32_1 = arith.constant 0 : i32
    return %c0_i32, %c0_i32_0 : i32, i32
  }
  func.func @transform_5(%arg0: i32) -> (i32, i32) {
    %c0_i32 = arith.constant 0 : i32
    %c0_i32_0 = arith.constant 0 : i32
    %c0_i32_1 = arith.constant 0 : i32
    return %c0_i32, %c0_i32_0 : i32, i32
  }
  func.func @transform_6(%arg0: i32) -> (i32, i32) {
    %c0_i32 = arith.constant 0 : i32
    %c0_i32_0 = arith.constant 0 : i32
    %c0_i32_1 = arith.constant 0 : i32
    return %c0_i32, %c0_i32_0 : i32, i32
  }
  func.func @transform_7(%arg0: i32) -> (i32, i32) {
    %c0_i32 = arith.constant 0 : i32
    %c0_i32_0 = arith.constant 0 : i32
    %c0_i32_1 = arith.constant 0 : i32
    return %c0_i32, %c0_i32_0 : i32, i32
  }
  func.func @transform_8(%arg0: i32) -> (i32, i32) {
    %c0_i32 = arith.constant 0 : i32
    %c0_i32_0 = arith.constant 0 : i32
    %c0_i32_1 = arith.constant 0 : i32
    return %c0_i32, %c0_i32_0 : i32, i32
  }
  func.func @transform_9(%arg0: i32) -> (i32, i32) {
    %c0_i32 = arith.constant 0 : i32
    %c0_i32_0 = arith.constant 0 : i32
    %c0_i32_1 = arith.constant 0 : i32
    return %c0_i32, %c0_i32_0 : i32, i32
  }
  func.func @transform_10(%arg0: i32) -> (i32, i32, i32) {
    %c0_i32 = arith.constant 0 : i32
    %c0_i32_0 = arith.constant 0 : i32
    %c0_i32_1 = arith.constant 0 : i32
    return %arg0, %c0_i32, %c0_i32_0 : i32, i32, i32
  }
}

</mosaic_0001>

<bundles_post_ra>
// kernel: tpu_custom_call.1
= control target key start
LH: loop header
LB: loop body
LE: loop exit
PB: predicated region body
PF: predicated region fallthrough
CT: control target
= control target key end

     0   :  { %15 = vsyncpa [#allocation3], 0  ;;  %s3520_s0 = inlined_call_operand.hbm [shape: f32[2,8,128], index: 0, kind: input, shape index: {}]   ;;  %s3521_s1 = inlined_call_operand.hbm [shape: f32[2,8,128], index: 1, kind: input, shape index: {}]   ;;  %s3522_s2 = inlined_call_operand.hbm [shape: f32[128,128], index: 2, kind: input, shape index: {}]   ;;  %s3523_s3 = inlined_call_operand.hbm [shape: bf16[128,128], index: 3, kind: input, shape index: {}]   ;;  %s3524_s4 = inlined_call_operand.hbm [shape: bf16[128,256], index: 4, kind: input, shape index: {}]   ;;  %s3525_s5 = inlined_call_operand.hbm [shape: bf16[128,128], index: 5, kind: input, shape index: {}]   ;;  %s3526_s6 = inlined_call_operand.hbm [shape: bf16[128,512], index: 6, kind: input, shape index: {}]   ;;  %s3527_s7 = inlined_call_operand.hbm [shape: bf16[512,128], index: 7, kind: input, shape index: {}]   ;;  %s3528_s8 = inlined_call_operand.vmem [shape: f32[8,128], index: 8, kind: input, shape index: {}]   ;;  %s3529_s9 = inlined_call_operand.vmem [shape: f32[1,512], index: 9, kind: input, shape index: {}]   ;;  %s3530_s10 = inlined_call_operand.hbm [shape: f32[2,8,128], index: 10, kind: output, shape index: {}]  }
   0x1   :  { %16 = vsyncpa [#allocation6], 0 }
   0x2   :  { %17 = vsyncpa [#allocation9], 0 }
   0x3   :  { %18 = vsyncpa [#allocation12], 0 }
   0x4   :  { %19 = vsyncpa [#allocation15], 0 }
   0x5   :  { %20 = vsyncpa [#allocation4], 0  ;;  %s2927_s13 = smov [#allocation5]   ;;  %s2928_s15 = smov [#allocation8]  }
   0x6   :  { %s38_s14 = sshll.u32 %s2927_s13, 4  ;;  %s62_s16 = sshll.u32 %s2928_s15, 4  ;;  %s39_s14 = int_to_ptr.vmem [resolvable:$true] %s38_s14  ;;  %s3005_s16 = int_to_ptr.vmem [resolvable:$true] %s62_s16 }
   0x7   :  { %s2717_s19 = scalar_lea.hbm %s3521_s1, 256 }
   0x8   :  { %p2718_p0 = scmp.ne.s32.totalorder %s3521_s1, %s2717_s19  ;;  %p2721_p1 = scmp.lt.u32.totalorder %s2717_s19, %s3521_s1 }
   0xa   :  { %p2723_p2 = pnand %p2721_p1, %p2718_p0 }
   0xc   :  { %2726 = shalt.err (!%p2723_p2)
}
   0xd   :  { %s2727_s24 = scalar_lea.vmem %s39_s14, 256  ;;  %p2732_p4 = scmp.lt.s32.totalorder %s39_s14, %s39_s14 }
   0xe   :  { %p2728_p3 = scmp.ne.s32.totalorder %s39_s14, %s2727_s24  ;;  %p2733_p5 = scmp.lt.s32.totalorder %s2727_s24, %s2727_s24 }
  0x10   :  { %p2734_p6 = por %p2733_p5, %p2732_p4 }
  0x12   :  { %p2735_p7 = pnand %p2734_p6, %p2728_p3 }
  0x14   :  { %2738 = shalt.err (!%p2735_p7)
}
  0x15   :  { %s2929_s25 = smov 128   ;;  %s2930_s26 = smov 8  }
  0x16   :  { %44 = dma.hbm_to_vmem [thread:$0]  %s3521_s1, 256, %s39_s14, [#allocation6], %s2929_s25, %s2929_s25, %s2930_s26  }
  0x17   :  { %s2739_s11 = scalar_lea.hbm %s3523_s3, 1024 }
  0x18   :  { %p2740_p8 = scmp.ne.s32.totalorder %s3523_s3, %s2739_s11  ;;  %p2743_p9 = scmp.lt.u32.totalorder %s2739_s11, %s3523_s3 }
  0x1a   :  { %p2745_p10 = pnand %p2743_p9, %p2740_p8 }
  0x1c   :  { %2748 = shalt.err (!%p2745_p10)
}
  0x1d   :  { %s2749_s18 = scalar_lea.vmem %s3005_s16, 1024  ;;  %p2754_p12 = scmp.lt.s32.totalorder %s3005_s16, %s3005_s16 }
  0x1e   :  { %p2750_p11 = scmp.ne.s32.totalorder %s3005_s16, %s2749_s18  ;;  %p2755_p13 = scmp.lt.s32.totalorder %s2749_s18, %s2749_s18 }
  0x20   :  { %p2756_p0 = por %p2755_p13, %p2754_p12 }
  0x22   :  { %p2757_p1 = pnand %p2756_p0, %p2750_p11 }
  0x24   :  { %2760 = shalt.err (!%p2757_p1)
}
  0x25   :  { %s2931_s1 = smov 64   ;;  %s2932_s14 = smov 4  }
  0x26   :  { %68 = dma.hbm_to_vmem [thread:$0]  %s3523_s3, 1024, %s3005_s16, [#allocation9], %s2931_s1, %s2931_s1, %s2932_s14  }
  0x27   :  { %s2933_s21 = smov [#allocation11]   ;;  %s2934_s23 = smov [#allocation2]  }
  0x28   :  { %s86_s22 = sshll.u32 %s2933_s21, 4  ;;  %s26_s24 = sshll.u32 %s2934_s23, 4  ;;  %s87_s22 = int_to_ptr.vmem [resolvable:$true] %s86_s22  ;;  %s3042_s24 = int_to_ptr.vmem [resolvable:$true] %s26_s24 }
  0x29   :  { %s2761_s29 = scalar_lea.hbm %s3525_s5, 1024 }
  0x2a   :  { %p2762_p2 = scmp.ne.s32.totalorder %s3525_s5, %s2761_s29  ;;  %p2765_p3 = scmp.lt.u32.totalorder %s2761_s29, %s3525_s5 }
  0x2c   :  { %p2767_p4 = pnand %p2765_p3, %p2762_p2 }
  0x2e   :  { %2770 = shalt.err (!%p2767_p4)
}
  0x2f   :  { %s2771_s3 = scalar_lea.vmem %s87_s22, 1024  ;;  %p2776_p6 = scmp.lt.s32.totalorder %s87_s22, %s87_s22 }
  0x30   :  { %p2772_p5 = scmp.ne.s32.totalorder %s87_s22, %s2771_s3  ;;  %p2777_p7 = scmp.lt.s32.totalorder %s2771_s3, %s2771_s3 }
  0x32   :  { %p2778_p8 = por %p2777_p7, %p2776_p6 }
  0x34   :  { %p2779_p9 = pnand %p2778_p8, %p2772_p5 }
  0x36   :  { %2782 = shalt.err (!%p2779_p9)
}
  0x37   :  { %92 = dma.hbm_to_vmem [thread:$0]  %s3525_s5, 1024, %s87_s22, [#allocation12], %s2931_s1, %s2931_s1, %s2932_s14  }
  0x38   :  { %s2783_s19 = scalar_lea.hbm %s3520_s0, 256 }
  0x39   :  { %p2784_p10 = scmp.ne.s32.totalorder %s3520_s0, %s2783_s19  ;;  %p2787_p11 = scmp.lt.u32.totalorder %s2783_s19, %s3520_s0 }
  0x3b   :  { %p2789_p12 = pnand %p2787_p11, %p2784_p10 }
  0x3d   :  { %2792 = shalt.err (!%p2789_p12)
}
  0x3e   :  { %s2793_s28 = scalar_lea.vmem %s3042_s24, 256  ;;  %p2798_p0 = scmp.lt.s32.totalorder %s3042_s24, %s3042_s24 }
  0x3f   :  { %p2794_p13 = scmp.ne.s32.totalorder %s3042_s24, %s2793_s28  ;;  %p2799_p1 = scmp.lt.s32.totalorder %s2793_s28, %s2793_s28 }
  0x41   :  { %p2800_p2 = por %p2799_p1, %p2798_p0 }
  0x43   :  { %p2801_p3 = pnand %p2800_p2, %p2794_p13 }
  0x45   :  { %2804 = shalt.err (!%p2801_p3)
}
  0x46   :  { %32 = dma.hbm_to_vmem [thread:$0]  %s3520_s0, 256, %s3042_s24, [#allocation3], %s2929_s25, %s2929_s25, %s2930_s26  }
  0x47   :  { %s2935_s29 = smov [#allocation7]   ;;  %s2936_s11 = smov [#allocation10]  }
  0x48   :  { %s50_s30 = sshll.u32 %s2935_s29, 4  ;;  %s74_s12 = sshll.u32 %s2936_s11, 4  ;;  %s51_s30 = int_to_ptr.vmem [resolvable:$true] %s50_s30  ;;  %s3079_s12 = int_to_ptr.vmem [resolvable:$true] %s74_s12 }
  0x49   :  { %s2805_s16 = scalar_lea.hbm %s3522_s2, 2048 }
  0x4a   :  { %p2806_p4 = scmp.ne.s32.totalorder %s3522_s2, %s2805_s16  ;;  %p2809_p5 = scmp.lt.u32.totalorder %s2805_s16, %s3522_s2 }
  0x4c   :  { %p2811_p6 = pnand %p2809_p5, %p2806_p4 }
  0x4e   :  { %2814 = shalt.err (!%p2811_p6)
}
  0x4f   :  { %s2815_s0 = scalar_lea.vmem %s51_s30, 2048  ;;  %p2820_p8 = scmp.lt.s32.totalorder %s51_s30, %s51_s30 }
  0x50   :  { %p2816_p7 = scmp.ne.s32.totalorder %s51_s30, %s2815_s0  ;;  %p2821_p9 = scmp.lt.s32.totalorder %s2815_s0, %s2815_s0 }
  0x52   :  { %p2822_p10 = por %p2821_p9, %p2820_p8 }
  0x54   :  { %p2823_p11 = pnand %p2822_p10, %p2816_p7 }
  0x56   :  { %2826 = shalt.err (!%p2823_p11)
}
  0x57   :  { %56 = dma.hbm_to_vmem [thread:$0]  %s3522_s2, 2048, %s51_s30, [#allocation6], %s2929_s25, %s2929_s25, %s2930_s26  }
  0x58   :  { %s2827_s27 = scalar_lea.hbm %s3524_s4, 2048 }
  0x59   :  { %p2828_p12 = scmp.ne.s32.totalorder %s3524_s4, %s2827_s27  ;;  %p2831_p13 = scmp.lt.u32.totalorder %s2827_s27, %s3524_s4 }
  0x5b   :  { %p2833_p0 = pnand %p2831_p13, %p2828_p12 }
  0x5d   :  { %2836 = shalt.err (!%p2833_p0)
}
  0x5e   :  { %s2837_s11 = scalar_lea.vmem %s3079_s12, 2048  ;;  %p2842_p2 = scmp.lt.s32.totalorder %s3079_s12, %s3079_s12 }
  0x5f   :  { %p2838_p1 = scmp.ne.s32.totalorder %s3079_s12, %s2837_s11  ;;  %p2843_p3 = scmp.lt.s32.totalorder %s2837_s11, %s2837_s11 }
  0x61   :  { %p2844_p4 = por %p2843_p3, %p2842_p2 }
  0x63   :  { %p2845_p5 = pnand %p2844_p4, %p2838_p1 }
  0x65   :  { %2848 = shalt.err (!%p2845_p5)
}
  0x66   :  { %80 = dma.hbm_to_vmem [thread:$0]  %s3524_s4, 2048, %s3079_s12, [#allocation9], %s2929_s25, %s2929_s25, %s2930_s26  }
  0x67   :  { %s2937_s13 = smov [#allocation13]   ;;  %s2849_s17 = scalar_lea.hbm %s3526_s6, 4096 }
  0x68   :  { %s98_s3 = sshll.u32 %s2937_s13, 4  ;;  %p2850_p6 = scmp.ne.s32.totalorder %s3526_s6, %s2849_s17  ;;  %s99_s3 = int_to_ptr.vmem [resolvable:$true] %s98_s3 }
  0x69   :  { %p2853_p7 = scmp.lt.u32.totalorder %s2849_s17, %s3526_s6 }
  0x6b   :  { %p2855_p8 = pnand %p2853_p7, %p2850_p6 }
  0x6d   :  { %2858 = shalt.err (!%p2855_p8)
}
  0x6e   :  { %s2859_s20 = scalar_lea.vmem %s99_s3, 4096  ;;  %p2864_p10 = scmp.lt.s32.totalorder %s99_s3, %s99_s3 }
  0x6f   :  { %p2860_p9 = scmp.ne.s32.totalorder %s99_s3, %s2859_s20  ;;  %p2865_p11 = scmp.lt.s32.totalorder %s2859_s20, %s2859_s20 }
  0x71   :  { %p2866_p12 = por %p2865_p11, %p2864_p10 }
  0x73   :  { %p2867_p13 = pnand %p2866_p12, %p2860_p9 }
  0x75   :  { %2870 = shalt.err (!%p2867_p13)
}
  0x76   :  { %s2938_s4 = smov 256   ;;  %s2939_s12 = smov 16  }
  0x77   :  { %104 = dma.hbm_to_vmem [thread:$0]  %s3526_s6, 4096, %s99_s3, [#allocation12], %s2938_s4, %s2938_s4, %s2939_s12  }
  0x78   :  { %s2940_s27 = smov [#allocation14]   ;;  %s2871_s29 = scalar_lea.hbm %s3527_s7, 4096 }
  0x79   :  { %s110_s28 = sshll.u32 %s2940_s27, 4  ;;  %p2872_p0 = scmp.ne.s32.totalorder %s3527_s7, %s2871_s29  ;;  %s111_s28 = int_to_ptr.vmem [resolvable:$true] %s110_s28 }
  0x7a   :  { %p2875_p1 = scmp.lt.u32.totalorder %s2871_s29, %s3527_s7 }
  0x7c   :  { %p2877_p2 = pnand %p2875_p1, %p2872_p0 }
  0x7e   :  { %2880 = shalt.err (!%p2877_p2)
}
  0x7f   :  { %s2881_s16 = scalar_lea.vmem %s111_s28, 4096  ;;  %p2886_p4 = scmp.lt.s32.totalorder %s111_s28, %s111_s28 }
  0x80   :  { %p2882_p3 = scmp.ne.s32.totalorder %s111_s28, %s2881_s16  ;;  %p2887_p5 = scmp.lt.s32.totalorder %s2881_s16, %s2881_s16 }
  0x82   :  { %p2888_p6 = por %p2887_p5, %p2886_p4 }
  0x84   :  { %p2889_p7 = pnand %p2888_p6, %p2882_p3 }
  0x86   :  { %2892 = shalt.err (!%p2889_p7)
}
  0x87   :  { %116 = dma.hbm_to_vmem [thread:$0]  %s3527_s7, 4096, %s111_s28, [#allocation15], %s2931_s1, %s2931_s1, %s2932_s14  }
  0x88   :  { %2915 = dma.done.wait [#allocation3], 256  }
  0x89   :  { %2916 = vsyncadd [#allocation3], 4294967040 }
  0x8a   :  { %2917 = dma.done.wait [#allocation6], 2304  }
  0x8b   :  { %2918 = vsyncadd [#allocation6], 4294964992 }
  0x8c   :  { %2919 = dma.done.wait [#allocation9], 3072  }
  0x8d   :  { %2920 = vsyncadd [#allocation9], 4294964224 }
  0x8e   :  { %2921 = dma.done.wait [#allocation12], 5120  }
  0x8f   :  { %2922 = vsyncadd [#allocation12], 4294962176 }
  0x90   :  { %2923 = dma.done.wait [#allocation15], 4096  }
  0x91   :  { %2924 = vsyncadd [#allocation15], 4294963200  ;;  %v2941_v0 = vmov 0   ;;  %v2942_v1 = vmov 0.0   ;;  %v3146_v2 = vld [vmem:[#allocation5] sm:$0xff]  ;;  %v3148_v3 = vld [vmem:[#allocation5 + $0x8] sm:$0xff]  ;;  %v178_v45 = vlaneseq }
  0x92   :  { %429 = vmatprep.mubr.bf16.mxu1 %v2941_v0  ;;  %2345 = vmatprep.subr.bf16.mxu0 %v2942_v1  ;;  %v158_v4 = vmul.f32 %v3146_v2, %v3146_v2  ;;  %v2508_v5 = vld [vmem:[#allocation10 + $0x4] ss:$8 sps:$4 sm:$0xff]   ;;  %v2510_v6 = vld [vmem:[#allocation10] ss:$8 sps:$4 sm:$0xff]   ;;  %v2511_v7 = vld [vmem:[#allocation10 + $0x14] ss:$8 sps:$4 sm:$0xff]   ;;  %v159_v8 = vmul.f32 %v3148_v3, %v3148_v3 }
  0x93   :  { %151 = vadd.xlane.f32.xlu0 %v3146_v2  ;;  %397 = vmatprep.subr.bf16.mxu1 %v2508_v5  ;;  %v2513_v9 = vld [vmem:[#allocation10 + $0x10] ss:$8 sps:$4 sm:$0xff]   ;;  %v2514_v10 = vld [vmem:[#allocation10 + $0x24] ss:$8 sps:$4 sm:$0xff]   ;;  %v2516_v11 = vld [vmem:[#allocation10 + $0x20] ss:$8 sps:$4 sm:$0xff]  }
  0x94   :  { %160 = vadd.xlane.f32.xlu1 %v158_v4  ;;  %398 = vmatpush1.bf16.msra.mxu1 %v2510_v6  ;;  %v2517_v12 = vld [vmem:[#allocation10 + $0x34] ss:$8 sps:$4 sm:$0xff]   ;;  %v2519_v13 = vld [vmem:[#allocation10 + $0x30] ss:$8 sps:$4 sm:$0xff]   ;;  %v2520_v14 = vld [vmem:[#allocation10 + $0x44] ss:$8 sps:$4 sm:$0xff]  }
  0x95   :  { %399 = vmatprep.subr.bf16.mxu1 %v2511_v7  ;;  %v2532_v15 = vld [vmem:[#allocation8] sm:$0xff]   ;;  %v2523_v17 = vld [vmem:[#allocation10 + $0x54] ss:$8 sps:$4 sm:$0xff]   ;;  %v2533_v18 = vld [vmem:[#allocation8 + $0x8] sm:$0xff]   ;;  %vm2943_vm0 = vmmov 0   ;;  %v3165_v48 = vshrl.u32 %v178_v45, 7 }
  0x96   :  { %v2522_v16 = vld [vmem:[#allocation10 + $0x40] ss:$8 sps:$4 sm:$0xff]   ;;  %2346 = vmatpush3.bf16.msra.mxu0 %v2532_v15  ;;  %v2525_v19 = vld [vmem:[#allocation10 + $0x50] ss:$8 sps:$4 sm:$0xff]   ;;  %v2526_v20 = vld [vmem:[#allocation10 + $0x64] ss:$8 sps:$4 sm:$0xff]   ;;  %2361 = vmatprep.mubr.msk.bf16.mxu0 %vm2943_vm0, %v2942_v1 }
  0x97   :  { %153 = vadd.xlane.f32.xlu0 %v3148_v3  ;;  %2347 = vmatprep.subr.bf16.mxu0 %v2942_v1  ;;  %v2534_v21 = vld [vmem:[#allocation8 + $0x10] sm:$0xff]   ;;  %v2528_v22 = vld [vmem:[#allocation10 + $0x60] ss:$8 sps:$4 sm:$0xff]   ;;  %v2535_v24 = vld [vmem:[#allocation8 + $0x18] sm:$0xff]   ;;  %v180_v49 = vsub.s32 4, %v3165_v48  ;;  %v186_v55 = vsub.s32 5, %v3165_v48 }
  0x98   :  { %162 = vadd.xlane.f32.xlu1 %v159_v8  ;;  %400 = vmatpush1.bf16.msra.mxu1 %v2513_v9  ;;  %v2529_v23 = vld [vmem:[#allocation10 + $0x74] ss:$8 sps:$4 sm:$0xff]   ;;  %v2531_v25 = vld [vmem:[#allocation10 + $0x70] ss:$8 sps:$4 sm:$0xff]   ;;  %v2536_v26 = vld [vmem:[#allocation8 + $0x20] sm:$0xff]   ;;  %v442_v4 = vsub.s32 1, %v3165_v48 }
  0x99   :  { %401 = vmatprep.subr.bf16.mxu1 %v2514_v10  ;;  %v147_v27 = vld [vmem:[#allocation2] sm:$0xff]  ;;  %v148_v28 = vld [vmem:[#allocation2 + $0x8] sm:$0xff]  ;;  %v2538_v31 = vld [vmem:[#allocation8 + $0x30] sm:$0xff]   ;;  %v448_v5 = vsub.s32 2, %v3165_v48  ;;  %vm523_vm1 = vcmask 130048   ;;  %s2944_s15 = smov 112  }
  0x9a   :  { %2348 = vmatpush3.bf16.msra.mxu0 %v2533_v18  ;;  %v2537_v29 = vld [vmem:[#allocation8 + $0x28] sm:$0xff]   ;;  %v191_v30 = vpack.c.bf16 %v148_v28, %v147_v27  ;;  %v2539_v32 = vld [vmem:[#allocation8 + $0x38] sm:$0xff]   ;;  %v3171_v50 = vld [vmem:[%s3528_s8] sm:$0xff]  ;;  %s2945_s17 = smov 96   ;;  %s2946_s18 = smov 80  }
  0x9b   :  { %2349 = vmatprep.subr.bf16.mxu0 %v2942_v1  ;;  %v181_v54 = vrot.slane %v3171_v50, %v180_v49  ;;  %v187_v60 = vrot.slane %v3171_v50, %v186_v55  ;;  %v449_v6 = vrot.slane %v3171_v50, %v448_v5  ;;  %s2947_s19 = smov 48   ;;  %s2948_s0 = smov 32   ;;  %v509_v49 = vld [vmem:[#allocation7 + $0x10] sm:$0xff]  ;;  %v507_v55 = vld [vmem:[#allocation7] sm:$0xff] }
  0x9c   :  { %402 = vmatpush1.bf16.msra.mxu1 %v2516_v11  ;;  %s2949_s4 = smov [#allocation16]  }
  0x9d   :  { %403 = vmatprep.subr.bf16.mxu1 %v2517_v12 }
  0x9e   :  { %2350 = vmatpush3.bf16.msra.mxu0 %v2534_v21 }
  0x9f   :  { %2351 = vmatprep.subr.bf16.mxu0 %v2942_v1 }
  0xa0   :  { %404 = vmatpush1.bf16.msra.mxu1 %v2519_v13 }
  0xa1   :  { %405 = vmatprep.subr.bf16.mxu1 %v2520_v14 }
  0xa2   :  { %2352 = vmatpush3.bf16.msra.mxu0 %v2535_v24 }
  0xa3   :  { %2353 = vmatprep.subr.bf16.mxu0 %v2942_v1 }
  0xa4   :  { %406 = vmatpush1.bf16.msra.mxu1 %v2522_v16 }
  0xa5   :  { %407 = vmatprep.subr.bf16.mxu1 %v2523_v17 }
  0xa6   :  { %2354 = vmatpush3.bf16.msra.mxu0 %v2536_v26 }
  0xa7   :  { %2355 = vmatprep.subr.bf16.mxu0 %v2942_v1 }
  0xa8   :  { %408 = vmatpush1.bf16.msra.mxu1 %v2525_v19 }
  0xa9   :  { %409 = vmatprep.subr.bf16.mxu1 %v2526_v20 }
  0xaa   :  { %2356 = vmatpush3.bf16.msra.mxu0 %v2537_v29 }
  0xab   :  { %2357 = vmatprep.subr.bf16.mxu0 %v2942_v1 }
  0xac   :  { %410 = vmatpush1.bf16.msra.mxu1 %v2528_v22 }
  0xad   :  { %411 = vmatprep.subr.bf16.mxu1 %v2529_v23  ;;  %v210_v23 = vsub.s32 0, %v3165_v48 }
  0xae   :  { %2358 = vmatpush3.bf16.msra.mxu0 %v2538_v31 }
  0xaf   :  { %2359 = vmatprep.subr.bf16.mxu0 %v2942_v1  ;;  %v211_v26 = vrot.slane %v3171_v50, %v210_v23 }
  0xb0   :  { %412 = vmatpush1.bf16.msra.mxu1 %v2531_v25 }
  0xb2   :  { %2360 = vmatpush3.bf16.msra.mxu0 %v2539_v32 }
  0xb3   :  { %430 = vmatmul.mubr.bf16.vlgmr.msra.gmra.mrb[0].mxu1 %v191_v30 }
 0x120   :  { %v152_v33 = vpop.xlane.xlu0 %151 }
 0x121   :  { %v156_v34 = vmul.f32 0.0078125, %v152_v33  ;;  %v161_v35 = vpop.xlane.xlu1 %160 }
 0x122   :  { %v164_v37 = vmul.f32 0.0078125, %v161_v35 }
 0x123   :  { %v166_v36 = vmul.f32 %v156_v34, %v156_v34  ;;  %v170_v51 = vsub.f32 %v3146_v2, %v156_v34 }
 0x124   :  { %v154_v38 = vpop.xlane.xlu0 %153 }
 0x125   :  { %v168_v39 = vsub.f32 %v164_v37, %v166_v36  ;;  %v157_v40 = vmul.f32 0.0078125, %v154_v38  ;;  %v163_v41 = vpop.xlane.xlu1 %162 }
 0x126   :  { %v165_v44 = vmul.f32 0.0078125, %v163_v41 }
 0x127   :  { %v172_v42 = vadd.f32 1e-05, %v168_v39  ;;  %v167_v43 = vmul.f32 %v157_v40, %v157_v40  ;;  %v171_v56 = vsub.f32 %v3148_v3, %v157_v40  ;;  %v443_v3 = vrot.slane %v3171_v50, %v442_v4 }
 0x129   :  { %2628 = vrsqrt.f32 %v172_v42  ;;  %v169_v46 = vsub.f32 %v165_v44, %v167_v43 }
 0x12b   :  { %v173_v47 = vadd.f32 1e-05, %v169_v46 }
 0x12d   :  { %2630 = vrsqrt.f32 %v173_v47 }
 0x133   :  { %v2629_v52 = vpop.eup %2628 }
 0x134   :  { %v176_v53 = vmul.f32 %v2629_v52, %v170_v51 }
 0x136   :  { %v182_v59 = vmul.f32 %v181_v54, %v176_v53 }
 0x137   :  { %v2631_v57 = vpop.eup %2630 }
 0x138   :  { %v177_v58 = vmul.f32 %v2631_v57, %v171_v56  ;;  %v3178_v62 = vadd.f32 %v187_v60, %v182_v59 }
 0x13a   :  { %v183_v61 = vmul.f32 %v181_v54, %v177_v58  ;;  %v508_v54 = vld [vmem:[#allocation7 + $0x8] sm:$0xff] }
 0x13c   :  { %v3180_v63 = vadd.f32 %v187_v60, %v183_v61  ;;  %v510_v60 = vld [vmem:[#allocation7 + $0x18] sm:$0xff] }
 0x13e   :  { %v190_v2 = vpack.c.bf16 %v3180_v63, %v3178_v62 }
 0x140   :  { %2362 = vmatmul.mubr.bf16.vlgmr.msra.gmra.mrb[0].mxu0 %v190_v2 }
 0x186   :  { %v431_v7 = vpop.f32.mrb[0].mxu1 }
 0x187   :  { %v444_v8 = vadd.f32 %v443_v3, %v431_v7  ;;  %v433_v9 = vpop.f32.mrb[1].mxu1 }
 0x188   :  { %v450_v10 = vadd.f32 %v449_v6, %v433_v9  ;;  %v435_v11 = vpop.f32.mrb[2].mxu1 }
 0x189   :  { %v445_v12 = vadd.f32 %v443_v3, %v435_v11  ;;  %v437_v13 = vpop.f32.mrb[3].mxu1 }
 0x18a   :  { %v451_v14 = vadd.f32 %v449_v6, %v437_v13  ;;  %v513_v6 = vld [vmem:[#allocation7 + $0x30] sm:$0xff] }
 0x18b   :  { %v468_v15 = vpack.c.bf16 %v445_v12, %v444_v8 }
 0x18c   :  { %v3192_v16 = vpack.c.bf16 %v451_v14, %v450_v10  ;;  %v511_v10 = vld [vmem:[#allocation7 + $0x20] sm:$0xff] }
 0x18d   :  { %470 = vrot.lane.b32.xlu0 %v468_v15, %s2944_s15  ;;  %472 = vrot.lane.b32.xlu1 %v468_v15, %s2945_s17  ;;  %v549_v17 = vsel %vm523_vm1, %v468_v15, 0 }
 0x18e   :  { %2397 = vmatprep.subr.bf16.mxu1 %v3192_v16  ;;  %2477 = vmatprep.subr.msk.bf16.mxu0 %vm523_vm1, %v468_v15 }
 0x18f   :  { %2398 = vmatpush3.bf16.msra.mxu1 %v3192_v16  ;;  %2366 = vmatpush3.bf16.xpose.msra.mxu0 %v549_v17 }
 0x191   :  { %474 = vrot.lane.b32.xlu1 %v468_v15, %s2946_s18  ;;  %478 = vrot.lane.b32.xlu0 %v468_v15, %s2947_s19 }
 0x195   :  { %476 = vrot.lane.b32.xlu1 %v468_v15, %s2931_s1  ;;  %482 = vrot.lane.b32.xlu0 %v468_v15, %s2939_s12 }
 0x199   :  { %480 = vrot.lane.b32.xlu1 %v468_v15, %s2948_s0 }
 0x1ff   :  { %v471_v18 = vpop.permute.xlu0 %470  ;;  %v473_v19 = vpop.permute.xlu1 %472 }
 0x200   :  { %v552_v20 = vsel %vm523_vm1, %v471_v18, 0  ;;  %2478 = vmatprep.subr.msk.bf16.mxu0 %vm523_vm1, %v471_v18  ;;  %v555_v21 = vsel %vm523_vm1, %v473_v19, 0 }
 0x201   :  { %2368 = vmatpush3.bf16.xpose.msra.mxu0 %v552_v20 }
 0x202   :  { %2479 = vmatprep.subr.msk.bf16.mxu0 %vm523_vm1, %v473_v19 }
 0x203   :  { %v475_v22 = vpop.permute.xlu1 %474  ;;  %v479_v35 = vpop.permute.xlu0 %478 }
 0x204   :  { %v558_v24 = vsel %vm523_vm1, %v475_v22, 0  ;;  %v564_v36 = vsel %vm523_vm1, %v479_v35, 0 }
 0x207   :  { %v477_v25 = vpop.permute.xlu1 %476  ;;  %v483_v39 = vpop.permute.xlu0 %482 }
 0x208   :  { %v561_v34 = vsel %vm523_vm1, %v477_v25, 0  ;;  %v570_v40 = vsel %vm523_vm1, %v483_v39, 0 }
 0x209   :  { %2370 = vmatpush3.bf16.xpose.msra.mxu0 %v555_v21  ;;  %v514_v21 = vld [vmem:[#allocation7 + $0x38] sm:$0xff] }
 0x20a   :  { %2480 = vmatprep.subr.msk.bf16.mxu0 %vm523_vm1, %v475_v22 }
 0x20b   :  { %v481_v37 = vpop.permute.xlu1 %480 }
 0x20c   :  { %v567_v38 = vsel %vm523_vm1, %v481_v37, 0 }
 0x211   :  { %2372 = vmatpush3.bf16.xpose.msra.mxu0 %v558_v24  ;;  %v512_v24 = vld [vmem:[#allocation7 + $0x28] sm:$0xff] }
 0x212   :  { %2481 = vmatprep.subr.msk.bf16.mxu0 %vm523_vm1, %v477_v25  ;;  %v517_v25 = vld [vmem:[#allocation7 + $0x50] sm:$0xff] }
 0x213   :  { %v294_v27 = vpop.f32.mrb[0].mxu0 }
 0x214   :  { %v2363_v28 = vpop.f32.mrb[1].mxu0  ;;  %v295_v30 = vadd.f32 %v294_v27, %v211_v26 }
 0x215   :  { %v297_v29 = vpop.f32.mrb[2].mxu0  ;;  %v518_v28 = vld [vmem:[#allocation7 + $0x58] sm:$0xff] }
 0x216   :  { %v298_v31 = vadd.f32 %v297_v29, %v211_v26  ;;  %v2364_v32 = vpop.f32.mrb[3].mxu0  ;;  %v515_v29 = vld [vmem:[#allocation7 + $0x40] sm:$0xff] }
 0x217   :  { %v516_v32 = vld [vmem:[#allocation7 + $0x48] sm:$0xff] }
 0x218   :  { %v452_v33 = vpack.c.bf16 %v298_v31, %v295_v30 }
 0x219   :  { %2374 = vmatpush3.bf16.xpose.msra.mxu0 %v561_v34 }
 0x21a   :  { %456 = vrot.lane.b32.xlu0 %v452_v33, %s2945_s17  ;;  %454 = vrot.lane.b32.xlu1 %v452_v33, %s2944_s15 }
 0x21b   :  { %2381 = vmatprep.mubr.msk.bf16.mxu0 %vm523_vm1, %v452_v33  ;;  %2482 = vmatprep.subr.msk.bf16.mxu0 %vm523_vm1, %v479_v35 }
 0x21e   :  { %460 = vrot.lane.b32.xlu0 %v452_v33, %s2931_s1  ;;  %458 = vrot.lane.b32.xlu1 %v452_v33, %s2946_s18 }
 0x221   :  { %2376 = vmatpush3.bf16.xpose.msra.mxu0 %v564_v36  ;;  %v522_v36 = vld [vmem:[#allocation7 + $0x78] sm:$0xff] }
 0x222   :  { %464 = vrot.lane.b32.xlu0 %v452_v33, %s2948_s0  ;;  %462 = vrot.lane.b32.xlu1 %v452_v33, %s2947_s19 }
 0x223   :  { %2483 = vmatprep.subr.msk.bf16.mxu0 %vm523_vm1, %v481_v37  ;;  %v519_v37 = vld [vmem:[#allocation7 + $0x60] sm:$0xff] }
 0x226   :  { %466 = vrot.lane.b32.xlu1 %v452_v33, %s2939_s12  ;;  %v521_v33 = vld [vmem:[#allocation7 + $0x70] sm:$0xff] }
 0x229   :  { %2378 = vmatpush3.bf16.xpose.msra.mxu0 %v567_v38 }
 0x22a   :  { %2484 = vmatprep.subr.msk.bf16.mxu0 %vm523_vm1, %v483_v39 }
 0x231   :  { %2380 = vmatpush3.bf16.xpose.msra.mxu0 %v570_v40  ;;  %v520_v40 = vld [vmem:[#allocation7 + $0x68] sm:$0xff] }
 0x232   :  { %2453 = vmatprep.subr.bf16.mxu0 %v2942_v1 }
 0x28c   :  { %v457_v41 = vpop.permute.xlu0 %456  ;;  %v455_v42 = vpop.permute.xlu1 %454 }
 0x28d   :  { %2382 = vmatmul.mubr.msk.bf16.vlgmr.msra.gmra.mrb[4].mxu0 %vm523_vm1, %v455_v42 }
 0x28e   :  { %2385 = vmatprep.mubr.msk.bf16.mxu0 %vm523_vm1, %v457_v41 }
 0x290   :  { %v459_v43 = vpop.permute.xlu1 %458  ;;  %v461_v44 = vpop.permute.xlu0 %460 }
 0x294   :  { %v463_v45 = vpop.permute.xlu1 %462  ;;  %v465_v46 = vpop.permute.xlu0 %464 }
 0x295   :  { %2386 = vmatmul.mubr.msk.bf16.gmra.mrb[8].mxu0 %vm523_vm1, %v459_v43 }
 0x296   :  { %2389 = vmatprep.mubr.msk.bf16.mxu0 %vm523_vm1, %v461_v44 }
 0x298   :  { %v467_v47 = vpop.permute.xlu1 %466 }
 0x29d   :  { %2390 = vmatmul.mubr.msk.bf16.gmra.mrb[12].mxu0 %vm523_vm1, %v463_v45 }
 0x29e   :  { %2393 = vmatprep.mubr.msk.bf16.mxu0 %vm523_vm1, %v465_v46 }
 0x2a5   :  { %2394 = vmatmul.mubr.msk.bf16.gmra.mrb[16].mxu0 %vm523_vm1, %v467_v47 }
 0x2a6   :  { %2455 = vmatprep.mubr.msk.bf16.mxu0 %vm2943_vm0, %v2942_v1 }
 0x360   :  { %v2383_v51 = vpop.f32.mrb[4].mxu0 }
 0x361   :  { %v3241_v52 = vadd.f32 %v2383_v51, %v509_v49  ;;  %v606_v53 = vpop.f32.mrb[5].mxu0 }
 0x362   :  { %v2384_v56 = vpop.f32.mrb[6].mxu0  ;;  %v3246_v59 = vadd.f32 %v606_v53, %v507_v55 }
 0x363   :  { %673 = vmax.xlane.f32.xlu0 %v3241_v52  ;;  %v609_v57 = vpop.f32.mrb[7].mxu0  ;;  %v3250_v2 = vadd.f32 %v2384_v56, %v510_v60 }
 0x364   :  { %v3244_v58 = vadd.f32 %v609_v57, %v508_v54 }
 0x366   :  { %671 = vmax.xlane.f32.xlu1 %v3244_v58 }
 0x367   :  { %669 = vmax.xlane.f32.xlu0 %v3246_v59 }
 0x368   :  { %v2387_v61 = vpop.f32.mrb[8].mxu0 }
 0x369   :  { %v622_v3 = vpop.f32.mrb[9].mxu0  ;;  %v3253_v9 = vadd.f32 %v2387_v61, %v513_v6 }
 0x36a   :  { %v2388_v7 = vpop.f32.mrb[10].mxu0  ;;  %v3256_v12 = vadd.f32 %v622_v3, %v511_v10 }
 0x36b   :  { %v625_v8 = vpop.f32.mrb[11].mxu0  ;;  %675 = vmax.xlane.f32.xlu0 %v3250_v2  ;;  %v3267_v22 = vadd.f32 %v2388_v7, %v514_v21 }
 0x36c   :  { %v3270_v26 = vadd.f32 %v625_v8, %v512_v24 }
 0x36f   :  { %681 = vmax.xlane.f32.xlu0 %v3253_v9 }
 0x370   :  { %v2391_v11 = vpop.f32.mrb[12].mxu0 }
 0x371   :  { %v638_v13 = vpop.f32.mrb[13].mxu0  ;;  %v3272_v27 = vadd.f32 %v2391_v11, %v517_v25 }
 0x372   :  { %v2392_v14 = vpop.f32.mrb[14].mxu0  ;;  %v3278_v31 = vadd.f32 %v638_v13, %v515_v29 }
 0x373   :  { %v641_v15 = vpop.f32.mrb[15].mxu0  ;;  %677 = vmax.xlane.f32.xlu0 %v3256_v12  ;;  %v3276_v30 = vadd.f32 %v2392_v14, %v518_v28 }
 0x374   :  { %v3282_v34 = vadd.f32 %v641_v15, %v516_v32 }
 0x377   :  { %489 = vrot.lane.b32.xlu1 %v3192_v16, %s2945_s17 }
 0x378   :  { %v2395_v17 = vpop.f32.mrb[16].mxu0 }
 0x379   :  { %v654_v18 = vpop.f32.mrb[17].mxu0  ;;  %v3284_v35 = vadd.f32 %v2395_v17, %v521_v33 }
 0x37a   :  { %v2396_v19 = vpop.f32.mrb[18].mxu0  ;;  %v3290_v39 = vadd.f32 %v654_v18, %v519_v37 }
 0x37b   :  { %v657_v20 = vpop.f32.mrb[19].mxu0  ;;  %492 = vrot.lane.b32.xlu1 %v3192_v16, %s2946_s18  ;;  %v3288_v38 = vadd.f32 %v2396_v19, %v522_v36 }
 0x37c   :  { %v3294_v41 = vadd.f32 %v657_v20, %v520_v40 }
 0x37f   :  { %495 = vrot.lane.b32.xlu1 %v3192_v16, %s2931_s1 }
 0x389   :  { %486 = vrot.lane.b32.xlu0 %v3192_v16, %s2944_s15 }
 0x3a3   :  { %683 = vmax.xlane.f32.xlu1 %v3267_v22 }
 0x3a7   :  { %679 = vmax.xlane.f32.xlu1 %v3270_v26 }
 0x3a8   :  { %689 = vmax.xlane.f32.xlu0 %v3272_v27 }
 0x3ab   :  { %691 = vmax.xlane.f32.xlu1 %v3276_v30 }
 0x3ac   :  { %685 = vmax.xlane.f32.xlu0 %v3278_v31 }
 0x3af   :  { %687 = vmax.xlane.f32.xlu1 %v3282_v34 }
 0x3b0   :  { %697 = vmax.xlane.f32.xlu0 %v3284_v35 }
 0x3b3   :  { %699 = vmax.xlane.f32.xlu1 %v3288_v38 }
 0x3b4   :  { %693 = vmax.xlane.f32.xlu0 %v3290_v39 }
 0x3b7   :  { %695 = vmax.xlane.f32.xlu1 %v3294_v41 }
 0x3f0   :  { %v674_v42 = vpop.xlane.xlu0 %673 }
 0x3f1   :  { %v703_v43 = vsub.f32 %v3241_v52, %v674_v42 }
 0x3f3   :  { %v721_v44 = vmul.f32 1.442695, %v703_v43  ;;  %v672_v46 = vpop.xlane.xlu1 %671 }
 0x3f4   :  { %v670_v45 = vpop.xlane.xlu0 %669  ;;  %v702_v51 = vsub.f32 %v3244_v58, %v672_v46 }
 0x3f5   :  { %2632 = vpow2.f32 %v721_v44  ;;  %v701_v47 = vsub.f32 %v3246_v59, %v670_v45 }
 0x3f6   :  { %v719_v56 = vmul.f32 1.442695, %v702_v51 }
 0x3f7   :  { %v717_v49 = vmul.f32 1.442695, %v701_v47  ;;  %v490_v3 = vpop.permute.xlu1 %489 }
 0x3f8   :  { %v676_v53 = vpop.xlane.xlu0 %675 }
 0x3f9   :  { %2634 = vpow2.f32 %v717_v49  ;;  %v704_v54 = vsub.f32 %v3250_v2, %v676_v53 }
 0x3fb   :  { %v723_v55 = vmul.f32 1.442695, %v704_v54 }
 0x3fc   :  { %v682_v57 = vpop.xlane.xlu0 %681 }
 0x3fd   :  { %2636 = vpow2.f32 %v723_v55  ;;  %v707_v60 = vsub.f32 %v3253_v9, %v682_v57  ;;  %v493_v9 = vpop.permute.xlu1 %492 }
 0x3fe   :  { %2638 = vpow2.f32 %v719_v56 }
 0x3ff   :  { %v3302_v52 = vpop.eup %2632  ;;  %v729_v61 = vmul.f32 1.442695, %v707_v60 }
 0x400   :  { %753 = vadd.xlane.f32.xlu0 %v3302_v52  ;;  %v678_v59 = vpop.xlane.xlu0 %677 }
 0x401   :  { %2640 = vpow2.f32 %v729_v61  ;;  %v705_v58 = vsub.f32 %v3256_v12, %v678_v59  ;;  %v496_v12 = vpop.permute.xlu1 %495 }
 0x403   :  { %v3306_v6 = vpop.eup %2634  ;;  %v725_v2 = vmul.f32 1.442695, %v705_v58 }
 0x404   :  { %749 = vadd.xlane.f32.xlu0 %v3306_v6  ;;  %v487_v7 = vpop.permute.xlu0 %486 }
 0x405   :  { %2642 = vpow2.f32 %v725_v2  ;;  %2399 = vmatprep.subr.bf16.mxu1 %v487_v7 }
 0x406   :  { %2400 = vmatpush3.bf16.msra.mxu1 %v487_v7 }
 0x407   :  { %v3309_v8 = vpop.eup %2636  ;;  %2401 = vmatprep.subr.bf16.mxu1 %v490_v3 }
 0x408   :  { %755 = vadd.xlane.f32.xlu1 %v3309_v8  ;;  %v3312_v10 = vpop.eup %2638 }
 0x40a   :  { %2402 = vmatpush3.bf16.msra.mxu1 %v490_v3 }
 0x40b   :  { %v3314_v11 = vpop.eup %2640  ;;  %2403 = vmatprep.subr.bf16.mxu1 %v493_v9 }
 0x40c   :  { %751 = vadd.xlane.f32.xlu1 %v3312_v10  ;;  %761 = vadd.xlane.f32.xlu0 %v3314_v11 }
 0x40e   :  { %2404 = vmatpush3.bf16.msra.mxu1 %v493_v9 }
 0x40f   :  { %v3318_v13 = vpop.eup %2642  ;;  %2405 = vmatprep.subr.bf16.mxu1 %v496_v12 }
 0x410   :  { %757 = vadd.xlane.f32.xlu0 %v3318_v13 }
 0x412   :  { %2406 = vmatpush3.bf16.msra.mxu1 %v496_v12 }
 0x41d   :  { %501 = vrot.lane.b32.xlu1 %v3192_v16, %s2948_s0 }
 0x430   :  { %v684_v14 = vpop.xlane.xlu1 %683 }
 0x431   :  { %v708_v15 = vsub.f32 %v3267_v22, %v684_v14 }
 0x433   :  { %v731_v17 = vmul.f32 1.442695, %v708_v15 }
 0x434   :  { %v680_v18 = vpop.xlane.xlu1 %679 }
 0x435   :  { %2644 = vpow2.f32 %v731_v17  ;;  %v706_v19 = vsub.f32 %v3270_v26, %v680_v18  ;;  %v690_v25 = vpop.xlane.xlu0 %689 }
 0x436   :  { %v711_v32 = vsub.f32 %v3272_v27, %v690_v25 }
 0x437   :  { %v727_v20 = vmul.f32 1.442695, %v706_v19 }
 0x438   :  { %v692_v22 = vpop.xlane.xlu1 %691  ;;  %v737_v37 = vmul.f32 1.442695, %v711_v32 }
 0x439   :  { %2646 = vpow2.f32 %v727_v20  ;;  %v686_v28 = vpop.xlane.xlu0 %685  ;;  %v712_v43 = vsub.f32 %v3276_v30, %v692_v22 }
 0x43a   :  { %v709_v33 = vsub.f32 %v3278_v31, %v686_v28  ;;  %2648 = vpow2.f32 %v737_v37 }
 0x43b   :  { %v739_v47 = vmul.f32 1.442695, %v712_v43 }
 0x43c   :  { %v688_v26 = vpop.xlane.xlu1 %687  ;;  %v733_v44 = vmul.f32 1.442695, %v709_v33 }
 0x43d   :  { %v698_v29 = vpop.xlane.xlu0 %697  ;;  %v710_v40 = vsub.f32 %v3282_v34, %v688_v26 }
 0x43e   :  { %2650 = vpow2.f32 %v733_v44  ;;  %v715_v49 = vsub.f32 %v3284_v35, %v698_v29 }
 0x43f   :  { %v3325_v21 = vpop.eup %2644  ;;  %v735_v45 = vmul.f32 1.442695, %v710_v40 }
 0x440   :  { %763 = vadd.xlane.f32.xlu0 %v3325_v21  ;;  %v700_v36 = vpop.xlane.xlu1 %699  ;;  %v745_v51 = vmul.f32 1.442695, %v715_v49 }
 0x441   :  { %v694_v42 = vpop.xlane.xlu0 %693  ;;  %2652 = vpow2.f32 %v735_v45  ;;  %v716_v34 = vsub.f32 %v3288_v38, %v700_v36 }
 0x442   :  { %2654 = vpow2.f32 %v739_v47 }
 0x443   :  { %v3328_v24 = vpop.eup %2646 }
 0x444   :  { %759 = vadd.xlane.f32.xlu1 %v3328_v24  ;;  %v696_v46 = vpop.xlane.xlu1 %695  ;;  %v3343_v53 = vpop.eup %2648 }
 0x445   :  { %v714_v31 = vsub.f32 %v3294_v41, %v696_v46 }
 0x447   :  { %v743_v30 = vmul.f32 1.442695, %v714_v31 }
 0x448   :  { %v3346_v54 = vpop.eup %2650 }
 0x44b   :  { %v3348_v35 = vpop.eup %2652 }
 0x44c   :  { %v3352_v41 = vpop.eup %2654 }
 0x455   :  { %504 = vrot.lane.b32.xlu1 %v3192_v16, %s2939_s12  ;;  %s2116_s12 = sshll.u32 %s2949_s4, 4  ;;  %s2117_s12 = int_to_ptr.vmem [resolvable:$true] %s2116_s12 }
 0x456   :  { %498 = vrot.lane.b32.xlu0 %v3192_v16, %s2947_s19  ;;  %v713_v16 = vsub.f32 %v3290_v39, %v694_v42  ;;  %v747_v39 = vmul.f32 1.442695, %v716_v34  ;;  %p2898_p9 = scmp.lt.s32.totalorder %s2117_s12, %s2117_s12 }
 0x458   :  { %v741_v27 = vmul.f32 1.442695, %v713_v16 }
 0x45a   :  { %2656 = vpow2.f32 %v741_v27 }
 0x45b   :  { %2658 = vpow2.f32 %v745_v51 }
 0x45c   :  { %2660 = vpow2.f32 %v743_v30 }
 0x45d   :  { %2662 = vpow2.f32 %v747_v39 }
 0x464   :  { %v3354_v38 = vpop.eup %2656 }
 0x465   :  { %v3358_v55 = vpop.eup %2658 }
 0x466   :  { %v3360_v56 = vpop.eup %2660 }
 0x467   :  { %v3364_v57 = vpop.eup %2662 }
 0x475   :  { %769 = vadd.xlane.f32.xlu0 %v3343_v53 }
 0x479   :  { %767 = vadd.xlane.f32.xlu0 %v3348_v35  ;;  %765 = vadd.xlane.f32.xlu1 %v3346_v54 }
 0x47d   :  { %771 = vadd.xlane.f32.xlu0 %v3352_v41  ;;  %773 = vadd.xlane.f32.xlu1 %v3354_v38 }
 0x481   :  { %775 = vadd.xlane.f32.xlu0 %v3360_v56  ;;  %777 = vadd.xlane.f32.xlu1 %v3358_v55 }
 0x485   :  { %779 = vadd.xlane.f32.xlu0 %v3364_v57 }
 0x48d   :  { %v754_v60 = vpop.xlane.xlu0 %753 }
 0x491   :  { %v750_v61 = vpop.xlane.xlu0 %749 }
 0x492   :  { %2664 = vrcp.f32 %v750_v61 }
 0x495   :  { %v756_v59 = vpop.xlane.xlu1 %755 }
 0x499   :  { %v752_v58 = vpop.xlane.xlu1 %751  ;;  %v762_v14 = vpop.xlane.xlu0 %761 }
 0x49a   :  { %2666 = vrcp.f32 %v752_v58 }
 0x49b   :  { %2668 = vrcp.f32 %v756_v59 }
 0x49c   :  { %v2665_v3 = vpop.eup %2664  ;;  %2670 = vrcp.f32 %v754_v60 }
 0x49d   :  { %v797_v7 = vmul.f32 %v2665_v3, %v3306_v6  ;;  %v758_v15 = vpop.xlane.xlu0 %757  ;;  %v502_v17 = vpop.permute.xlu1 %501 }
 0x49e   :  { %2672 = vrcp.f32 %v758_v15 }
 0x4a4   :  { %v2667_v2 = vpop.eup %2666 }
 0x4a5   :  { %v798_v9 = vmul.f32 %v2667_v2, %v3312_v10  ;;  %v2669_v25 = vpop.eup %2668 }
 0x4a6   :  { %v2671_v6 = vpop.eup %2670  ;;  %v800_v22 = vmul.f32 %v2669_v25, %v3309_v8 }
 0x4a7   :  { %v813_v12 = vpack.c.bf16 %v798_v9, %v797_v7  ;;  %v799_v26 = vmul.f32 %v2671_v6, %v3302_v52  ;;  %v2542_v6 = vld [vmem:[#allocation11 + $0x10] sm:$0xff]  }
 0x4a8   :  { %v2673_v28 = vpop.eup %2672 }
 0x4a9   :  { %2413 = vmatprep.mubr.bf16.mxu1 %v813_v12  ;;  %v814_v32 = vpack.c.bf16 %v800_v22, %v799_v26  ;;  %v801_v36 = vmul.f32 %v2673_v28, %v3318_v13  ;;  %v2543_v26 = vld [vmem:[#allocation11 + $0x18] sm:$0xff]  }
 0x4cd   :  { %v764_v18 = vpop.xlane.xlu0 %763 }
 0x4d1   :  { %v760_v19 = vpop.xlane.xlu1 %759  ;;  %v499_v20 = vpop.permute.xlu0 %498 }
 0x4d2   :  { %2674 = vrcp.f32 %v760_v19  ;;  %2407 = vmatprep.subr.bf16.mxu1 %v499_v20 }
 0x4d3   :  { %2676 = vrcp.f32 %v764_v18  ;;  %2408 = vmatpush3.bf16.msra.mxu1 %v499_v20 }
 0x4d4   :  { %2409 = vmatprep.subr.bf16.mxu1 %v502_v17  ;;  %2678 = vrcp.f32 %v762_v14 }
 0x4d5   :  { %v505_v10 = vpop.permute.xlu1 %504 }
 0x4d7   :  { %2410 = vmatpush3.bf16.msra.mxu1 %v502_v17 }
 0x4d8   :  { %2411 = vmatprep.subr.bf16.mxu1 %v505_v10 }
 0x4db   :  { %2412 = vmatpush3.bf16.msra.mxu1 %v505_v10 }
 0x4dc   :  { %v2675_v29 = vpop.eup %2674  ;;  %2429 = vmatprep.subr.bf16.mxu1 %v2942_v1 }
 0x4dd   :  { %v2677_v33 = vpop.eup %2676  ;;  %v802_v37 = vmul.f32 %v2675_v29, %v3328_v24  ;;  %v2545_v29 = vld [vmem:[#allocation11 + $0x28] sm:$0xff]  }
 0x4de   :  { %2414 = vmatmul.mubr.bf16.vlgmr.msra.gmra.mrb[4].mxu1 %v814_v32  ;;  %v2679_v40 = vpop.eup %2678  ;;  %v804_v43 = vmul.f32 %v2677_v33, %v3325_v21 }
 0x4df   :  { %v815_v42 = vpack.c.bf16 %v802_v37, %v801_v36  ;;  %v803_v8 = vmul.f32 %v2679_v40, %v3314_v11  ;;  %v2547_v37 = vld [vmem:[#allocation11 + $0x38] sm:$0xff]  }
 0x4e1   :  { %2417 = vmatprep.mubr.bf16.mxu1 %v815_v42  ;;  %v816_v44 = vpack.c.bf16 %v804_v43, %v803_v8  ;;  %v2546_v43 = vld [vmem:[#allocation11 + $0x30] sm:$0xff]  }
 0x4e6   :  { %2418 = vmatmul.mubr.bf16.gmra.mrb[8].mxu1 %v816_v44 }
 0x502   :  { %v770_v52 = vpop.xlane.xlu0 %769 }
 0x506   :  { %v766_v45 = vpop.xlane.xlu1 %765  ;;  %v768_v16 = vpop.xlane.xlu0 %767 }
 0x507   :  { %2680 = vrcp.f32 %v766_v45 }
 0x508   :  { %2682 = vrcp.f32 %v768_v16 }
 0x509   :  { %2684 = vrcp.f32 %v770_v52 }
 0x50a   :  { %v774_v46 = vpop.xlane.xlu1 %773  ;;  %v772_v13 = vpop.xlane.xlu0 %771 }
 0x50b   :  { %2686 = vrcp.f32 %v772_v13 }
 0x50c   :  { %2688 = vrcp.f32 %v774_v46 }
 0x50e   :  { %v778_v24 = vpop.xlane.xlu1 %777  ;;  %v776_v47 = vpop.xlane.xlu0 %775 }
 0x50f   :  { %2690 = vrcp.f32 %v776_v47  ;;  %v2550_v47 = vld [vmem:[#allocation13 + $0x4] ss:$16 sps:$4 sm:$0xff]  }
 0x510   :  { %2692 = vrcp.f32 %v778_v24  ;;  %v2548_v24 = vld [vmem:[#allocation13] ss:$16 sps:$4 sm:$0xff]  }
 0x511   :  { %v2681_v49 = vpop.eup %2680 }
 0x512   :  { %v2683_v21 = vpop.eup %2682  ;;  %v780_v27 = vpop.xlane.xlu0 %779  ;;  %v805_v11 = vmul.f32 %v2681_v49, %v3346_v54  ;;  %v2551_v49 = vld [vmem:[#allocation13 + $0x8] ss:$16 sps:$4 sm:$0xff]  }
 0x513   :  { %2694 = vrcp.f32 %v780_v27  ;;  %v806_v31 = vmul.f32 %v2683_v21, %v3348_v35  ;;  %v2685_v51 = vpop.eup %2684  ;;  %v2553_v21 = vld [vmem:[#allocation13 + $0xc] ss:$16 sps:$4 sm:$0xff]   ;;  %v2556_v27 = vld [vmem:[#allocation13 + $0x24] ss:$16 sps:$4 sm:$0xff]  }
 0x514   :  { %v807_v39 = vmul.f32 %v2685_v51, %v3343_v53  ;;  %v2540_v53 = vld [vmem:[#allocation11 + $0x8] sm:$0xff]  }
 0x515   :  { %v817_v34 = vpack.c.bf16 %v806_v31, %v805_v11  ;;  %v2687_v30 = vpop.eup %2686  ;;  %2430 = vmatpush3.bf16.msra.mxu1 %v2540_v53  ;;  %v2554_v11 = vld [vmem:[#allocation13 + $0x20] ss:$16 sps:$4 sm:$0xff]   ;;  %v2557_v31 = vld [vmem:[#allocation13 + $0x28] ss:$16 sps:$4 sm:$0xff]  }
 0x516   :  { %v808_v60 = vmul.f32 %v2687_v30, %v3352_v41  ;;  %v2689_v61 = vpop.eup %2688  ;;  %2435 = vmatprep.subr.bf16.mxu1 %v2942_v1  ;;  %v2544_v41 = vld [vmem:[#allocation11 + $0x20] sm:$0xff]  }
 0x517   :  { %2421 = vmatprep.mubr.bf16.mxu1 %v817_v34  ;;  %v809_v2 = vmul.f32 %v2689_v61, %v3354_v38  ;;  %2454 = vmatpush3.bf16.msra.mxu0 %v2544_v41 }
 0x518   :  { %v818_v59 = vpack.c.bf16 %v808_v60, %v807_v39  ;;  %2465 = vmatprep.subr.bf16.mxu0 %v2942_v1 }
 0x519   :  { %v2691_v58 = vpop.eup %2690 }
 0x51a   :  { %v2693_v3 = vpop.eup %2692  ;;  %2422 = vmatmul.mubr.bf16.gmra.mrb[12].mxu1 %v818_v59  ;;  %v810_v54 = vmul.f32 %v2691_v58, %v3360_v56 }
 0x51b   :  { %v811_v35 = vmul.f32 %v2693_v3, %v3358_v55  ;;  %v2541_v55 = vld [vmem:[#allocation11] sm:$0xff]  }
 0x51c   :  { %v819_v9 = vpack.c.bf16 %v810_v54, %v809_v2 }
 0x51d   :  { %v2695_v7 = vpop.eup %2694 }
 0x51e   :  { %v812_v12 = vmul.f32 %v2695_v7, %v3364_v57  ;;  %2425 = vmatprep.mubr.bf16.mxu1 %v819_v9 }
 0x520   :  { %v820_v14 = vpack.c.bf16 %v812_v12, %v811_v35 }
 0x522   :  { %2426 = vmatmul.mubr.bf16.gmra.mrb[16].mxu1 %v820_v14 }
 0x523   :  { %2431 = vmatprep.mubr.msk.bf16.mxu1 %vm2943_vm0, %v2942_v1 }
 0x5b1   :  { %v2415_v38 = vpop.f32.mrb[4].mxu1 }
 0x5b2   :  { %v855_v56 = vpop.f32.mrb[5].mxu1 }
 0x5b3   :  { %v2416_v15 = vpop.f32.mrb[6].mxu1 }
 0x5b4   :  { %v919_v17 = vpack.c.bf16 %v2416_v15, %v2415_v38  ;;  %v858_v57 = vpop.f32.mrb[7].mxu1 }
 0x5b5   :  { %v918_v18 = vpack.c.bf16 %v858_v57, %v855_v56 }
 0x5b6   :  { %2432 = vmatmul.mubr.msk.bf16.vlgmr.msra.gmra.mrb[20].mxu1 %vm523_vm1, %v919_v17 }
 0x5b7   :  { %2436 = vmatpush3.bf16.msra.mxu1 %v2541_v55  ;;  %2437 = vmatprep.mubr.msk.bf16.mxu1 %vm2943_vm0, %v2942_v1 }
 0x5b8   :  { %2441 = vmatprep.subr.bf16.mxu1 %v2942_v1 }
 0x5b9   :  { %v2419_v19 = vpop.f32.mrb[8].mxu1 }
 0x5ba   :  { %v871_v20 = vpop.f32.mrb[9].mxu1 }
 0x5bb   :  { %v2420_v25 = vpop.f32.mrb[10].mxu1 }
 0x5bc   :  { %v921_v10 = vpack.c.bf16 %v2420_v25, %v2419_v19  ;;  %v874_v22 = vpop.f32.mrb[11].mxu1 }
 0x5bd   :  { %v920_v28 = vpack.c.bf16 %v874_v22, %v871_v20 }
 0x5be   :  { %2438 = vmatmul.mubr.msk.bf16.vlgmr.msra.gmra.mrb[24].mxu1 %vm523_vm1, %v918_v18 }
 0x5bf   :  { %2442 = vmatpush3.bf16.msra.mxu1 %v2542_v6  ;;  %2443 = vmatprep.mubr.msk.bf16.mxu1 %vm2943_vm0, %v2942_v1 }
 0x5c0   :  { %2447 = vmatprep.subr.bf16.mxu1 %v2942_v1 }
 0x5c6   :  { %2444 = vmatmul.mubr.msk.bf16.vlgmr.msra.gmra.mrb[28].mxu1 %vm523_vm1, %v920_v28 }
 0x5c7   :  { %2448 = vmatpush3.bf16.msra.mxu1 %v2543_v26  ;;  %2449 = vmatprep.mubr.msk.bf16.mxu1 %vm2943_vm0, %v2942_v1  ;;  %v1356_v26 = vsub.s32 3, %v3165_v48 }
 0x5c8   :  { %2459 = vmatprep.subr.bf16.mxu1 %v2942_v1 }
 0x5ce   :  { %2450 = vmatmul.mubr.msk.bf16.vlgmr.msra.gmra.mrb[32].mxu1 %vm523_vm1, %v921_v10 }
 0x5cf   :  { %2460 = vmatpush3.bf16.msra.mxu1 %v2545_v29  ;;  %2461 = vmatprep.mubr.msk.bf16.mxu1 %vm2943_vm0, %v2942_v1 }
 0x5d0   :  { %2471 = vmatprep.subr.bf16.mxu1 %v2942_v1 }
 0x5ed   :  { %v2423_v32 = vpop.f32.mrb[12].mxu1 }
 0x5ee   :  { %v887_v33 = vpop.f32.mrb[13].mxu1 }
 0x5ef   :  { %v2424_v36 = vpop.f32.mrb[14].mxu1 }
 0x5f0   :  { %v923_v40 = vpack.c.bf16 %v2424_v36, %v2423_v32  ;;  %v890_v42 = vpop.f32.mrb[15].mxu1 }
 0x5f1   :  { %v922_v8 = vpack.c.bf16 %v890_v42, %v887_v33 }
 0x5f2   :  { %2462 = vmatmul.mubr.msk.bf16.vlgmr.msra.gmra.mrb[36].mxu1 %vm523_vm1, %v923_v40  ;;  %v1357_v40 = vrot.slane %v3171_v50, %v1356_v26 }
 0x5f3   :  { %2456 = vmatmul.mubr.msk.bf16.vlgmr.msra.gmra.mrb[20].mxu0 %vm523_vm1, %v922_v8  ;;  %2472 = vmatpush3.bf16.msra.mxu1 %v2547_v37 }
 0x5f4   :  { %2466 = vmatpush3.bf16.msra.mxu0 %v2546_v43  ;;  %2473 = vmatprep.mubr.msk.bf16.mxu1 %vm2943_vm0, %v2942_v1 }
 0x5f5   :  { %v2427_v44 = vpop.f32.mrb[16].mxu1  ;;  %2467 = vmatprep.mubr.msk.bf16.mxu0 %vm2943_vm0, %v2942_v1  ;;  %1603 = vmatprep.subr.bf16.mxu0 %v2550_v47  ;;  %v2559_v1 = vld [vmem:[#allocation13 + $0x2c] ss:$16 sps:$4 sm:$0xff]  }
 0x5f6   :  { %v903_v52 = vpop.f32.mrb[17].mxu1  ;;  %1646 = vmatprep.subr.bf16.mxu1 %v2553_v21 }
 0x5f7   :  { %v2428_v45 = vpop.f32.mrb[18].mxu1 }
 0x5f8   :  { %v925_v16 = vpack.c.bf16 %v2428_v45, %v2427_v44  ;;  %v906_v46 = vpop.f32.mrb[19].mxu1 }
 0x5f9   :  { %v924_v13 = vpack.c.bf16 %v906_v46, %v903_v52 }
 0x5fa   :  { %2474 = vmatmul.mubr.msk.bf16.vlgmr.msra.gmra.mrb[40].mxu1 %vm523_vm1, %v925_v16 }
 0x5fb   :  { %2468 = vmatmul.mubr.msk.bf16.vlgmr.msra.gmra.mrb[24].mxu0 %vm523_vm1, %v924_v13  ;;  %1678 = vmatprep.mubr.bf16.mxu1 %v2941_v0 }
 0x5fc   :  { %1635 = vmatprep.mubr.bf16.mxu0 %v2941_v0  ;;  %1604 = vmatpush1.bf16.msra.mxu0 %v2548_v24 }
 0x5fd   :  { %1647 = vmatpush1.bf16.msra.mxu1 %v2551_v49  ;;  %1605 = vmatprep.subr.bf16.mxu0 %v2556_v27  ;;  %v2562_v27 = vld [vmem:[#allocation13 + $0x44] ss:$16 sps:$4 sm:$0xff]  }
 0x5fe   :  { %1648 = vmatprep.subr.bf16.mxu1 %v2559_v1  ;;  %v2565_v1 = vld [vmem:[#allocation13 + $0x4c] ss:$16 sps:$4 sm:$0xff]  }
 0x600   :  { %1606 = vmatpush1.bf16.msra.mxu0 %v2554_v11  ;;  %v2563_v11 = vld [vmem:[#allocation13 + $0x48] ss:$16 sps:$4 sm:$0xff]  }
 0x601   :  { %1649 = vmatpush1.bf16.msra.mxu1 %v2557_v31  ;;  %1607 = vmatprep.subr.bf16.mxu0 %v2562_v27  ;;  %v2571_v31 = vld [vmem:[#allocation13 + $0x6c] ss:$16 sps:$4 sm:$0xff]  }
 0x602   :  { %1650 = vmatprep.subr.bf16.mxu1 %v2565_v1  ;;  %v2608_v27 = vld [vmem:[#allocation14 + $0x58] sm:$0xff]  }
 0x603   :  { %v2609_v1 = vld [vmem:[#allocation14 + $0xd8] sm:$0xff]  }
 0x605   :  { %1651 = vmatpush1.bf16.msra.mxu1 %v2563_v11  ;;  %v2611_v11 = vld [vmem:[#allocation14 + $0x98] sm:$0xff]  }
 0x606   :  { %1652 = vmatprep.subr.bf16.mxu1 %v2571_v31  ;;  %v2613_v31 = vld [vmem:[#allocation14 + $0xe0] sm:$0xff]  }
 0x689   :  { %v985_v51 = vpop.f32.mrb[20].mxu1 }
 0x68a   :  { %v2433_v34 = vpop.f32.mrb[21].mxu1 }
 0x68b   :  { %v988_v30 = vpop.f32.mrb[22].mxu1  ;;  %v2569_v34 = vld [vmem:[#allocation13 + $0x68] ss:$16 sps:$4 sm:$0xff]  }
 0x68c   :  { %v2434_v0 = vpop.f32.mrb[23].mxu1  ;;  %1653 = vmatpush1.bf16.msra.mxu1 %v2569_v34  ;;  %v2615_v34 = vld [vmem:[#allocation14 + $0xa0] sm:$0xff]  }
 0x68d   :  { %v2577_v0 = vld [vmem:[#allocation13 + $0x8c] ss:$16 sps:$4 sm:$0xff]  }
 0x68e   :  { %1654 = vmatprep.subr.bf16.mxu1 %v2577_v0  ;;  %v2617_v0 = vld [vmem:[#allocation14 + $0xe8] sm:$0xff]  }
 0x691   :  { %v1035_v39 = vpop.f32.mrb[24].mxu1 }
 0x692   :  { %v1036_v60 = vadd.f32 %v1035_v39, %v985_v51  ;;  %v2439_v61 = vpop.f32.mrb[25].mxu1  ;;  %v2566_v51 = vld [vmem:[#allocation13 + $0x60] ss:$16 sps:$4 sm:$0xff]  }
 0x693   :  { %v1038_v59 = vpop.f32.mrb[26].mxu1  ;;  %v2572_v39 = vld [vmem:[#allocation13 + $0x80] ss:$16 sps:$4 sm:$0xff]  }
 0x694   :  { %v1039_v58 = vadd.f32 %v1038_v59, %v988_v30  ;;  %v2440_v3 = vpop.f32.mrb[27].mxu1  ;;  %v2574_v30 = vld [vmem:[#allocation13 + $0x84] ss:$16 sps:$4 sm:$0xff]   ;;  %v2578_v61 = vld [vmem:[#allocation13 + $0xa0] ss:$16 sps:$4 sm:$0xff]  }
 0x695   :  { %v2580_v59 = vld [vmem:[#allocation13 + $0xa4] ss:$16 sps:$4 sm:$0xff]   ;;  %v2583_v3 = vld [vmem:[#allocation13 + $0xac] ss:$16 sps:$4 sm:$0xff]  }
 0x699   :  { %v1085_v2 = vpop.f32.mrb[28].mxu1 }
 0x69a   :  { %v1092_v54 = vadd.f32 %v1085_v2, %v1036_v60  ;;  %v2445_v7 = vpop.f32.mrb[29].mxu1  ;;  %v2575_v60 = vld [vmem:[#allocation13 + $0x88] ss:$16 sps:$4 sm:$0xff]   ;;  %v2586_v2 = vld [vmem:[#allocation13 + $0xc4] ss:$16 sps:$4 sm:$0xff]  }
 0x69b   :  { %v1088_v9 = vpop.f32.mrb[30].mxu1  ;;  %1655 = vmatpush1.bf16.msra.mxu1 %v2575_v60  ;;  %v2584_v7 = vld [vmem:[#allocation13 + $0xc0] ss:$16 sps:$4 sm:$0xff]   ;;  %v2619_v60 = vld [vmem:[#allocation14 + $0xa8] sm:$0xff]  }
 0x69c   :  { %v1093_v35 = vadd.f32 %v1088_v9, %v1039_v58  ;;  %v2446_v12 = vpop.f32.mrb[31].mxu1  ;;  %v2581_v58 = vld [vmem:[#allocation13 + $0xa8] ss:$16 sps:$4 sm:$0xff]   ;;  %1656 = vmatprep.subr.bf16.mxu1 %v2583_v3  ;;  %v2623_v3 = vld [vmem:[#allocation14 + $0xb0] sm:$0xff]  }
 0x69d   :  { %v2587_v9 = vld [vmem:[#allocation13 + $0xc8] ss:$16 sps:$4 sm:$0xff]   ;;  %v2595_v12 = vld [vmem:[#allocation13 + $0xec] ss:$16 sps:$4 sm:$0xff]  }
 0x69f   :  { %1657 = vmatpush1.bf16.msra.mxu1 %v2581_v58  ;;  %v2622_v58 = vld [vmem:[#allocation14 + $0x30] sm:$0xff]  }
 0x6a1   :  { %v1137_v14 = vpop.f32.mrb[32].mxu1 }
 0x6a2   :  { %v1144_v53 = vadd.f32 %v1137_v14, %v1092_v54  ;;  %v2451_v41 = vpop.f32.mrb[33].mxu1  ;;  %v2589_v54 = vld [vmem:[#allocation13 + $0xcc] ss:$16 sps:$4 sm:$0xff]   ;;  %v2590_v14 = vld [vmem:[#allocation13 + $0xe0] ss:$16 sps:$4 sm:$0xff]  }
 0x6a3   :  { %v1140_v38 = vpop.f32.mrb[34].mxu1  ;;  %1658 = vmatprep.subr.bf16.mxu1 %v2589_v54  ;;  %v2625_v54 = vld [vmem:[#allocation14 + $0xf8] sm:$0xff]  }
 0x6a4   :  { %v1145_v56 = vadd.f32 %v1140_v38, %v1093_v35  ;;  %v2452_v15 = vpop.f32.mrb[35].mxu1  ;;  %v2592_v35 = vld [vmem:[#allocation13 + $0xe4] ss:$16 sps:$4 sm:$0xff]   ;;  %1659 = vmatpush1.bf16.msra.mxu1 %v2587_v9  ;;  %v2627_v9 = vld [vmem:[#allocation14 + $0xb8] sm:$0xff]  }
 0x6a5   :  { %1660 = vmatprep.subr.bf16.mxu1 %v2595_v12 }
 0x6c5   :  { %v1241_v55 = vpop.f32.mrb[36].mxu1 }
 0x6c6   :  { %v1189_v17 = vpop.f32.mrb[20].mxu0  ;;  %v2463_v57 = vpop.f32.mrb[37].mxu1 }
 0x6c7   :  { %v1196_v18 = vadd.f32 %v1189_v17, %v1144_v53  ;;  %v2457_v19 = vpop.f32.mrb[21].mxu0  ;;  %v1244_v20 = vpop.f32.mrb[38].mxu1  ;;  %v2593_v53 = vld [vmem:[#allocation13 + $0xe8] ss:$16 sps:$4 sm:$0xff]  }
 0x6c8   :  { %v1192_v25 = vpop.f32.mrb[22].mxu0  ;;  %v2464_v6 = vpop.f32.mrb[39].mxu1  ;;  %1661 = vmatpush1.bf16.msra.mxu1 %v2593_v53 }
 0x6c9   :  { %v1197_v10 = vadd.f32 %v1192_v25, %v1145_v56  ;;  %v2458_v22 = vpop.f32.mrb[23].mxu0  ;;  %v1248_v28 = vadd.f32 %v1241_v55, %v1196_v18 }
 0x6cb   :  { %v1249_v29 = vadd.f32 %v1244_v20, %v1197_v10 }
 0x6cd   :  { %v1345_v32 = vpop.f32.mrb[40].mxu1 }
 0x6ce   :  { %v1293_v33 = vpop.f32.mrb[24].mxu0  ;;  %v2475_v36 = vpop.f32.mrb[41].mxu1 }
 0x6cf   :  { %v1300_v37 = vadd.f32 %v1293_v33, %v1248_v28  ;;  %v2469_v42 = vpop.f32.mrb[25].mxu0  ;;  %v1348_v43 = vpop.f32.mrb[42].mxu1 }
 0x6d0   :  { %v1296_v8 = vpop.f32.mrb[26].mxu0  ;;  %v2476_v44 = vpop.f32.mrb[43].mxu1  ;;  %v2596_v42 = vld [vmem:[#allocation14 + $0x40] sm:$0xff]  }
 0x6d1   :  { %v1352_v52 = vadd.f32 %v1345_v32, %v1300_v37  ;;  %v1301_v45 = vadd.f32 %v1296_v8, %v1249_v29  ;;  %v2470_v16 = vpop.f32.mrb[27].mxu0  ;;  %v2598_v8 = vld [vmem:[#allocation14] sm:$0xff]  }
 0x6d2   :  { %v2599_v44 = vld [vmem:[#allocation14 + $0x80] sm:$0xff]   ;;  %v2602_v16 = vld [vmem:[#allocation14 + $0x8] sm:$0xff]  }
 0x6d3   :  { %v1358_v46 = vadd.f32 %v1357_v40, %v1352_v52  ;;  %v1353_v13 = vadd.f32 %v1348_v43, %v1301_v45  ;;  %v2597_v43 = vld [vmem:[#allocation14 + $0xc0] sm:$0xff]   ;;  %v2600_v52 = vld [vmem:[#allocation14 + $0x48] sm:$0xff]  }
 0x6d4   :  { %2323 = vmatprep.subr.bf16.mxu1 %v2597_v43  ;;  %v2601_v45 = vld [vmem:[#allocation14 + $0xc8] sm:$0xff]  }
 0x6d5   :  { %v3419_v24 = vadd.f32 %v1358_v46, %v3178_v62  ;;  %v1359_v47 = vadd.f32 %v1357_v40, %v1353_v13  ;;  %v2560_v62 = vld [vmem:[#allocation13 + $0x40] ss:$16 sps:$4 sm:$0xff]   ;;  %v2603_v46 = vld [vmem:[#allocation14 + $0x88] sm:$0xff]  }
 0x6d6   :  { %1608 = vmatpush1.bf16.msra.mxu0 %v2560_v62  ;;  %v2604_v13 = vld [vmem:[#allocation14 + $0x50] sm:$0xff]   ;;  %v2610_v62 = vld [vmem:[#allocation14 + $0x18] sm:$0xff]  }
 0x6d7   :  { %v3422_v49 = vadd.f32 %v1359_v47, %v3180_v63  ;;  %1362 = vadd.xlane.f32.xlu1 %v3419_v24  ;;  %v1368_v50 = vmul.f32 %v3419_v24, %v3419_v24  ;;  %v2568_v63 = vld [vmem:[#allocation13 + $0x64] ss:$16 sps:$4 sm:$0xff]  }
 0x6d8   :  { %1609 = vmatprep.subr.bf16.mxu0 %v2568_v63  ;;  %v2605_v47 = vld [vmem:[#allocation14 + $0xd0] sm:$0xff]   ;;  %v2612_v63 = vld [vmem:[#allocation14 + $0x60] sm:$0xff]  }
 0x6d9   :  { %1364 = vadd.xlane.f32.xlu0 %v3422_v49  ;;  %v1369_v21 = vmul.f32 %v3422_v49, %v3422_v49 }
 0x6da   :  { %1610 = vmatpush1.bf16.msra.mxu0 %v2566_v51  ;;  %v2614_v51 = vld [vmem:[#allocation14 + $0x20] sm:$0xff]  }
 0x6db   :  { %1370 = vadd.xlane.f32.xlu1 %v1368_v50  ;;  %1611 = vmatprep.subr.bf16.mxu0 %v2574_v30  ;;  %v2606_v50 = vld [vmem:[#allocation14 + $0x10] sm:$0xff]   ;;  %v2616_v30 = vld [vmem:[#allocation14 + $0x68] sm:$0xff]  }
 0x6dd   :  { %1372 = vadd.xlane.f32.xlu0 %v1369_v21  ;;  %v2607_v21 = vld [vmem:[#allocation14 + $0x90] sm:$0xff]  }
 0x6de   :  { %1612 = vmatpush1.bf16.msra.mxu0 %v2572_v39  ;;  %v2618_v39 = vld [vmem:[#allocation14 + $0x28] sm:$0xff]  }
 0x6df   :  { %1613 = vmatprep.subr.bf16.mxu0 %v2580_v59  ;;  %v2621_v59 = vld [vmem:[#allocation14 + $0xf0] sm:$0xff]  }
 0x6e2   :  { %1614 = vmatpush1.bf16.msra.mxu0 %v2578_v61  ;;  %v2620_v61 = vld [vmem:[#allocation14 + $0x70] sm:$0xff]  }
 0x6e3   :  { %1615 = vmatprep.subr.bf16.mxu0 %v2586_v2  ;;  %v2624_v2 = vld [vmem:[#allocation14 + $0x78] sm:$0xff]  }
 0x6e6   :  { %1616 = vmatpush1.bf16.msra.mxu0 %v2584_v7  ;;  %v2626_v7 = vld [vmem:[#allocation14 + $0x38] sm:$0xff]  }
 0x6e7   :  { %1617 = vmatprep.subr.bf16.mxu0 %v2592_v35  ;;  %v1421_v35 = vld [vmem:[%s3529_s9] sm:$0xf] }
 0x6e8   :  { %v1426_v12 = vrot.slane %v1421_v35, %v210_v23  ;;  %v1430_v53 = vrot.slane %v1421_v35, %v442_v4 }
 0x6ea   :  { %1618 = vmatpush1.bf16.msra.mxu0 %v2590_v14  ;;  %v1434_v14 = vrot.slane %v1421_v35, %v448_v5 }
 0x6eb   :  { %2301 = vmatprep.subr.bf16.mxu0 %v2596_v42 }
 0x764   :  { %v1363_v41 = vpop.xlane.xlu1 %1362 }
 0x765   :  { %v1366_v38 = vmul.f32 0.0078125, %v1363_v41  ;;  %v1438_v41 = vrot.slane %v1421_v35, %v1356_v26 }
 0x766   :  { %v1365_v56 = vpop.xlane.xlu0 %1364 }
 0x767   :  { %v1367_v15 = vmul.f32 0.0078125, %v1365_v56  ;;  %v1376_v17 = vmul.f32 %v1366_v38, %v1366_v38  ;;  %v1380_v29 = vsub.f32 %v3419_v24, %v1366_v38 }
 0x768   :  { %v1371_v55 = vpop.xlane.xlu1 %1370 }
 0x769   :  { %v1374_v57 = vmul.f32 0.0078125, %v1371_v55  ;;  %v1377_v19 = vmul.f32 %v1367_v15, %v1367_v15  ;;  %v1381_v32 = vsub.f32 %v3422_v49, %v1367_v15 }
 0x76a   :  { %v1373_v18 = vpop.xlane.xlu0 %1372 }
 0x76b   :  { %v1378_v20 = vsub.f32 %v1374_v57, %v1376_v17  ;;  %v1375_v25 = vmul.f32 0.0078125, %v1373_v18 }
 0x76d   :  { %v1382_v6 = vadd.f32 1e-05, %v1378_v20  ;;  %v1379_v10 = vsub.f32 %v1375_v25, %v1377_v19 }
 0x76f   :  { %2696 = vrsqrt.f32 %v1382_v6  ;;  %v1383_v22 = vadd.f32 1e-05, %v1379_v10 }
 0x771   :  { %2698 = vrsqrt.f32 %v1383_v22 }
 0x779   :  { %v2697_v28 = vpop.eup %2696 }
 0x77a   :  { %v1386_v36 = vmul.f32 %v2697_v28, %v1380_v29 }
 0x77b   :  { %v2699_v33 = vpop.eup %2698 }
 0x77c   :  { %v1387_v37 = vmul.f32 %v2699_v33, %v1381_v32 }
 0x77e   :  { %v1388_v40 = vpack.c.bf16 %v1387_v37, %v1386_v36 }
 0x780   :  { %1636 = vmatmul.mubr.bf16.vlgmr.msra.gmra.mrb[28].mxu0 %v1388_v40  ;;  %1679 = vmatmul.mubr.bf16.vlgmr.msra.gmra.mrb[44].mxu1 %v1388_v40 }
 0x781   :  { %2302 = vmatpush3.bf16.msra.mxu0 %v2598_v8  ;;  %2324 = vmatpush3.bf16.msra.mxu1 %v2599_v44 }
 0x782   :  { %2303 = vmatprep.subr.bf16.mxu0 %v2600_v52  ;;  %2325 = vmatprep.subr.bf16.mxu1 %v2601_v45 }
 0x785   :  { %2304 = vmatpush3.bf16.msra.mxu0 %v2602_v16  ;;  %2326 = vmatpush3.bf16.msra.mxu1 %v2603_v46 }
 0x786   :  { %2305 = vmatprep.subr.bf16.mxu0 %v2604_v13  ;;  %2327 = vmatprep.subr.bf16.mxu1 %v2605_v47 }
 0x789   :  { %2306 = vmatpush3.bf16.msra.mxu0 %v2606_v50  ;;  %2328 = vmatpush3.bf16.msra.mxu1 %v2607_v21 }
 0x78a   :  { %2307 = vmatprep.subr.bf16.mxu0 %v2608_v27  ;;  %2329 = vmatprep.subr.bf16.mxu1 %v2609_v1 }
 0x78d   :  { %2308 = vmatpush3.bf16.msra.mxu0 %v2610_v62  ;;  %2330 = vmatpush3.bf16.msra.mxu1 %v2611_v11 }
 0x78e   :  { %2309 = vmatprep.subr.bf16.mxu0 %v2612_v63  ;;  %2331 = vmatprep.subr.bf16.mxu1 %v2613_v31 }
 0x791   :  { %2310 = vmatpush3.bf16.msra.mxu0 %v2614_v51  ;;  %2332 = vmatpush3.bf16.msra.mxu1 %v2615_v34 }
 0x792   :  { %2311 = vmatprep.subr.bf16.mxu0 %v2616_v30  ;;  %2333 = vmatprep.subr.bf16.mxu1 %v2617_v0 }
 0x795   :  { %2312 = vmatpush3.bf16.msra.mxu0 %v2618_v39  ;;  %2334 = vmatpush3.bf16.msra.mxu1 %v2619_v60 }
 0x796   :  { %2313 = vmatprep.subr.bf16.mxu0 %v2620_v61  ;;  %2335 = vmatprep.subr.bf16.mxu1 %v2621_v59 }
 0x799   :  { %2314 = vmatpush3.bf16.msra.mxu0 %v2622_v58  ;;  %2336 = vmatpush3.bf16.msra.mxu1 %v2623_v3 }
 0x79a   :  { %2315 = vmatprep.subr.bf16.mxu0 %v2624_v2  ;;  %2337 = vmatprep.subr.bf16.mxu1 %v2625_v54 }
 0x79d   :  { %2316 = vmatpush3.bf16.msra.mxu0 %v2626_v7  ;;  %2338 = vmatpush3.bf16.msra.mxu1 %v2627_v9 }
 0x853   :  { %v1637_v38 = vpop.f32.mrb[28].mxu0  ;;  %v1680_v56 = vpop.f32.mrb[44].mxu1 }
 0x854   :  { %v3443_v15 = vadd.f32 %v1637_v38, %v1426_v12  ;;  %v3445_v55 = vadd.f32 %v1680_v56, %v1434_v14  ;;  %v1639_v17 = vpop.f32.mrb[29].mxu0  ;;  %v1682_v57 = vpop.f32.mrb[45].mxu1 }
 0x855   :  { %v3447_v18 = vadd.f32 %v1639_v17, %v1430_v53  ;;  %v3449_v23 = vadd.f32 %v1682_v57, %v1438_v41  ;;  %v1641_v19 = vpop.f32.mrb[30].mxu0  ;;  %v1684_v5 = vpop.f32.mrb[46].mxu1 }
 0x856   :  { %v1689_v4 = vmul.f32 %v3443_v15, %v3443_v15  ;;  %v1691_v26 = vmul.f32 %v3445_v55, %v3445_v55  ;;  %v3455_v20 = vadd.f32 %v1641_v19, %v1426_v12  ;;  %v3457_v25 = vadd.f32 %v1684_v5, %v1434_v14  ;;  %v1643_v6 = vpop.f32.mrb[31].mxu0  ;;  %v1686_v10 = vpop.f32.mrb[47].mxu1 }
 0x857   :  { %v1690_v22 = vmul.f32 %v3447_v18, %v3447_v18  ;;  %v1692_v28 = vmul.f32 %v3449_v23, %v3449_v23  ;;  %v3463_v29 = vadd.f32 %v1643_v6, %v1430_v53  ;;  %v3465_v32 = vadd.f32 %v1686_v10, %v1438_v41 }
 0x858   :  { %v1697_v33 = vmul.f32 %v1689_v4, %v3443_v15  ;;  %v1699_v36 = vmul.f32 %v1691_v26, %v3445_v55  ;;  %v1693_v37 = vmul.f32 %v3455_v20, %v3455_v20  ;;  %v1695_v40 = vmul.f32 %v3457_v25, %v3457_v25 }
 0x859   :  { %v1698_v42 = vmul.f32 %v1690_v22, %v3447_v18  ;;  %v1700_v43 = vmul.f32 %v1692_v28, %v3449_v23  ;;  %v1694_v8 = vmul.f32 %v3463_v29, %v3463_v29  ;;  %v1696_v44 = vmul.f32 %v3465_v32, %v3465_v32 }
 0x85a   :  { %v1705_v52 = vmul.f32 0.044715, %v1697_v33  ;;  %v1707_v45 = vmul.f32 0.044715, %v1699_v36  ;;  %v1701_v16 = vmul.f32 %v1693_v37, %v3455_v20  ;;  %v1703_v46 = vmul.f32 %v1695_v40, %v3457_v25 }
 0x85b   :  { %v1706_v13 = vmul.f32 0.044715, %v1698_v42  ;;  %v1708_v47 = vmul.f32 0.044715, %v1700_v43  ;;  %v1702_v50 = vmul.f32 %v1694_v8, %v3463_v29  ;;  %v1704_v21 = vmul.f32 %v1696_v44, %v3465_v32 }
 0x85c   :  { %v1713_v27 = vadd.f32 %v1705_v52, %v3443_v15  ;;  %v1715_v1 = vadd.f32 %v1707_v45, %v3445_v55  ;;  %v1709_v62 = vmul.f32 0.044715, %v1701_v16  ;;  %v1711_v11 = vmul.f32 0.044715, %v1703_v46 }
 0x85d   :  { %v1714_v63 = vadd.f32 %v1706_v13, %v3447_v18  ;;  %v1716_v31 = vadd.f32 %v1708_v47, %v3449_v23  ;;  %v1710_v51 = vmul.f32 0.044715, %v1702_v50  ;;  %v1712_v34 = vmul.f32 0.044715, %v1704_v21 }
 0x85e   :  { %v1721_v30 = vmul.f32 0.7978846, %v1713_v27  ;;  %v1723_v0 = vmul.f32 0.7978846, %v1715_v1  ;;  %v1717_v39 = vadd.f32 %v1709_v62, %v3455_v20  ;;  %v1719_v60 = vadd.f32 %v1711_v11, %v3457_v25 }
 0x85f   :  { %v1722_v61 = vmul.f32 0.7978846, %v1714_v63  ;;  %v1724_v59 = vmul.f32 0.7978846, %v1716_v31  ;;  %v1718_v58 = vadd.f32 %v1710_v51, %v3463_v29  ;;  %v1720_v3 = vadd.f32 %v1712_v34, %v3465_v32 }
 0x860   :  { %2700 = vtanh.f32 %v1721_v30  ;;  %v1725_v2 = vmul.f32 0.7978846, %v1717_v39  ;;  %v1727_v54 = vmul.f32 0.7978846, %v1719_v60 }
 0x861   :  { %2702 = vtanh.f32 %v1723_v0  ;;  %v1726_v7 = vmul.f32 0.7978846, %v1718_v58  ;;  %v1728_v9 = vmul.f32 0.7978846, %v1720_v3 }
 0x862   :  { %2704 = vtanh.f32 %v1722_v61 }
 0x863   :  { %2706 = vtanh.f32 %v1724_v59 }
 0x864   :  { %2708 = vtanh.f32 %v1725_v2 }
 0x865   :  { %2710 = vtanh.f32 %v1727_v54 }
 0x866   :  { %2712 = vtanh.f32 %v1726_v7 }
 0x867   :  { %2714 = vtanh.f32 %v1728_v9 }
 0x86a   :  { %v2701_v35 = vpop.eup %2700 }
 0x86b   :  { %v2703_v12 = vpop.eup %2702  ;;  %v1737_v14 = vadd.f32 1.0, %v2701_v35 }
 0x86c   :  { %v2705_v53 = vpop.eup %2704  ;;  %v1739_v41 = vadd.f32 1.0, %v2703_v12 }
 0x86d   :  { %v2707_v38 = vpop.eup %2706  ;;  %v1738_v56 = vadd.f32 1.0, %v2705_v53  ;;  %v1745_v5 = vmul.f32 0.5, %v1737_v14 }
 0x86e   :  { %v2709_v17 = vpop.eup %2708  ;;  %v1740_v57 = vadd.f32 1.0, %v2707_v38  ;;  %v1747_v6 = vmul.f32 0.5, %v1739_v41 }
 0x86f   :  { %v2711_v19 = vpop.eup %2710  ;;  %v1741_v4 = vadd.f32 1.0, %v2709_v17  ;;  %v1746_v36 = vmul.f32 0.5, %v1738_v56  ;;  %v1753_v43 = vmul.f32 %v1745_v5, %v3443_v15 }
 0x870   :  { %v2713_v26 = vpop.eup %2712  ;;  %v1743_v10 = vadd.f32 1.0, %v2711_v19  ;;  %v1748_v42 = vmul.f32 0.5, %v1740_v57  ;;  %v1755_v52 = vmul.f32 %v1747_v6, %v3445_v55  ;;  %v1831_v55 = vsub.s32 6, %v3165_v48 }
 0x871   :  { %v2715_v22 = vpop.eup %2714  ;;  %v1749_v28 = vmul.f32 0.5, %v1741_v4  ;;  %v1742_v33 = vadd.f32 1.0, %v2713_v26  ;;  %v1754_v46 = vmul.f32 %v1746_v36, %v3447_v18  ;;  %v2716_v18 = vld [vmem:[%s3528_s8] sm:$0xff]  ;;  %s2893_s8 = scalar_lea.vmem %s2117_s12, 256 }
 0x872   :  { %v1751_v37 = vmul.f32 0.5, %v1743_v10  ;;  %v1744_v40 = vadd.f32 1.0, %v2715_v22  ;;  %v1756_v50 = vmul.f32 %v1748_v42, %v3449_v23  ;;  %p2894_p8 = scmp.ne.s32.totalorder %s2117_s12, %s2893_s8  ;;  %p2899_p10 = scmp.lt.s32.totalorder %s2893_s8, %s2893_s8 }
 0x873   :  { %v1757_v8 = vmul.f32 %v1749_v28, %v3455_v20  ;;  %v1750_v44 = vmul.f32 0.5, %v1742_v33 }
 0x874   :  { %v1759_v45 = vmul.f32 %v1751_v37, %v3457_v25  ;;  %v1752_v16 = vmul.f32 0.5, %v1744_v40  ;;  %v1832_v25 = vrot.slane %v2716_v18, %v1831_v55  ;;  %p2900_p11 = por %p2899_p10, %p2898_p9 }
 0x875   :  { %v1758_v13 = vmul.f32 %v1750_v44, %v3463_v29  ;;  %v1761_v47 = vpack.c.bf16 %v1757_v8, %v1753_v43 }
 0x876   :  { %v1760_v21 = vmul.f32 %v1752_v16, %v3465_v32  ;;  %v1763_v27 = vpack.c.bf16 %v1759_v45, %v1755_v52  ;;  %p2901_p12 = pnand %p2900_p11, %p2894_p8 }
 0x877   :  { %v1762_v1 = vpack.c.bf16 %v1758_v13, %v1754_v46 }
 0x878   :  { %v1764_v15 = vpack.c.bf16 %v1760_v21, %v1756_v50 }
 0x879   :  { %2057 = vmatprep.mubr.bf16.mxu0 %v1762_v1 }
 0x87a   :  { %2098 = vmatprep.mubr.bf16.mxu1 %v1764_v15  ;;  %2058 = vmatmul.mubr.bf16.vlgmr.msra.gmra.mrb[32].mxu0 %v1761_v47 }
 0x87b   :  { %2099 = vmatmul.mubr.bf16.vlgmr.msra.gmra.mrb[48].mxu1 %v1763_v27 }
 0x94d   :  { %v2317_v20 = vpop.f32.mrb[32].mxu0 }
 0x94e   :  { %v2339_v29 = vpop.f32.mrb[48].mxu1  ;;  %v2318_v62 = vpop.f32.mrb[33].mxu0 }
 0x94f   :  { %v2319_v23 = vadd.f32 %v2318_v62, %v2317_v20  ;;  %v2340_v11 = vpop.f32.mrb[49].mxu1  ;;  %v2320_v32 = vpop.f32.mrb[34].mxu0 }
 0x950   :  { %v2341_v63 = vadd.f32 %v2340_v11, %v2339_v29  ;;  %v2342_v31 = vpop.f32.mrb[50].mxu1  ;;  %v2321_v51 = vpop.f32.mrb[35].mxu0 }
 0x951   :  { %v2060_v34 = vadd.f32 %v2319_v23, %v1832_v25  ;;  %v2322_v30 = vadd.f32 %v2321_v51, %v2320_v32  ;;  %v2343_v0 = vpop.f32.mrb[51].mxu1 }
 0x952   :  { %v2344_v39 = vadd.f32 %v2343_v0, %v2342_v31 }
 0x953   :  { %v2101_v60 = vadd.f32 %v2341_v63, %v2060_v34  ;;  %v2063_v48 = vadd.f32 %v2322_v30, %v1832_v25 }
 0x955   :  { %v2107_v61 = vadd.f32 %v2101_v60, %v3419_v24  ;;  %v2104_v59 = vadd.f32 %v2344_v39, %v2063_v48 }
 0x957   :  { %2109 = vst [vmem:[#allocation16] sm:$0xff] %v2107_v61  ;;  %v2108_v58 = vadd.f32 %v2104_v59, %v3422_v49 }
 0x959   :  { %2110 = vst [vmem:[#allocation16 + $0x8] sm:$0xff] %v2108_v58 }
 0x95a   :  { %2904 = shalt.err (!%p2901_p12)
}
 0x95b   :  { %s2905_s27 = scalar_lea.hbm %s3530_s10, 256 }
 0x95c   :  { %p2906_p13 = scmp.ne.s32.totalorder %s3530_s10, %s2905_s27  ;;  %p2909_p0 = scmp.lt.u32.totalorder %s2905_s27, %s3530_s10 }
 0x95e   :  { %p2911_p1 = pnand %p2909_p0, %p2906_p13 }
 0x960   :  { %2914 = shalt.err (!%p2911_p1)
}
 0x961   :  { %2122 = dma.vmem_to_hbm [thread:$0]  %s2117_s12, 256, %s3530_s10, [#allocation4], %s2929_s25, %s2929_s25, %s2930_s26  }
 0x962   :  { %2925 = dma.done.wait [#allocation4], 256  }
 0x963   :  { %2926 = vsyncadd [#allocation4], 4294967040 }
 0x964   :  { %2126 = vsyncpa [#allocation3], 1 }
 0x965   :  { %2127 = vsyncpa [#allocation6], 1 }
 0x966   :  { %2128 = vsyncpa [#allocation9], 1 }
 0x967   :  { %2129 = vsyncpa [#allocation12], 1 }
 0x968   :  { %2130 = vsyncpa [#allocation15], 1 }
 0x969   :  { %2131 = vsyncpa [#allocation4], 1 }

</bundles_post_ra>
